<compile_context>
chip_gen: v5e
topology: v5e:2x2
jax: 0.10.0
libtpu: 0.0.40
codegen_flags: <defaults>
</compile_context>

<pallas_src>
import functools

import jax
import jax.numpy as jnp
from jax.experimental import pallas as pl
from jax.experimental.pallas import tpu as pltpu

K = 4          # every (transposed) conv in this Generator uses a 4x4 kernel
BN_EPS = 1e-5  # torch BatchNorm2d default eps


# --------------------------------------------------------------------------------------
# Fused Pallas kernel: the whole generator forward in a single pallas_call
# --------------------------------------------------------------------------------------
def _generator_kernel(*refs, layer_has_bn, layer_inv_cnt):
    """refs = (z_ref, per-layer refs..., o_ref).

    Per layer:
      w_ref : (in_flat, out_flat)  dense linear map of the ConvTranspose2d
                                   (columns channel-fastest, except the final layer
                                    whose columns are (c, h, w) -> output is NCHW-flat)
    and, for BatchNorm layers only:
      g_ref : (1, C)      gamma
      b_ref : (1, C)      beta
      s_ref : (H*W*C, C)  channel selector   (reduce (1, HWC) -> per-channel (1, C))
      r_ref : (C, H*W*C)  channel broadcaster (expand (1, C)  -> (1, HWC))

    Activations stay (N, features) the whole way: one MXU matmul per layer, one-pass
    BN statistics via selector matmuls, then a fused scale/shift + ReLU.  No reshapes,
    slices, or zero-upsampled tensors inside the kernel.
    """
    z_ref = refs[0]
    o_ref = refs[-1]

    x = z_ref[...].astype(jnp.float32)
    idx = 1
    for has_bn, inv_cnt in zip(layer_has_bn, layer_inv_cnt):
        w_ref = refs[idx]
        idx += 1
        y = jnp.dot(x, w_ref[...], preferred_element_type=jnp.float32)
        if has_bn:
            g_ref, b_ref, s_ref, r_ref = refs[idx:idx + 4]
            idx += 4
            sel = s_ref[...]
            # One-pass batch statistics over (N, H, W) per channel.
            colsum = jnp.sum(y, axis=0, keepdims=True)        # (1, HWC)
            colsq = jnp.sum(y * y, axis=0, keepdims=True)     # (1, HWC)
            ch_sum = jnp.dot(colsum, sel, preferred_element_type=jnp.float32)  # (1, C)
            ch_sq = jnp.dot(colsq, sel, preferred_element_type=jnp.float32)    # (1, C)
            mean = ch_sum * inv_cnt
            var = ch_sq * inv_cnt - mean * mean
            scale = g_ref[...] * jax.lax.rsqrt(var + BN_EPS)  # (1, C)
            shift = b_ref[...] - mean * scale                 # (1, C)
            bro = r_ref[...]
            y = (y * jnp.dot(scale, bro, preferred_element_type=jnp.float32)
                 + jnp.dot(shift, bro, preferred_element_type=jnp.float32))
        x = jnp.maximum(y, 0.0)   # ReLU after every block (pro/exp: post-BN, out: bare)
    o_ref[...] = x.astype(o_ref.dtype)


# --------------------------------------------------------------------------------------
# Glue (plain JAX, built once): ConvTranspose2d as a dense (in_flat, out_flat) matrix
# --------------------------------------------------------------------------------------
def _deconv_dense_matrix(w_torch, stride, padding, hi, wi, channel_fastest_cols):
    """Dense matrix of ConvTranspose2d(k=4, stride, padding) acting on an (hi, wi) map.

    w_torch: (Cin, Cout, K, K) in torch ConvTranspose2d layout.
    Rows are ordered (iy, ix, ci); columns are (oy, ox, co) if channel_fastest_cols
    else (co, oy, ox).  ConvTranspose relation:  oy = iy*stride - padding + ky, i.e.
    M[(iy,ix,ci),(oy,ox,co)] = W[ci, co, oy+p-s*iy, ox+p-s*ix] when the taps are valid.
    """
    cin, cout, kh, kw = w_torch.shape
    ho = (hi - 1) * stride - 2 * padding + kh
    wo = (wi - 1) * stride - 2 * padding + kw

    iy = jnp.arange(hi)[:, None]
    oy = jnp.arange(ho)[None, :]
    ky = oy + padding - stride * iy                      # (hi, ho)
    vy = (ky >= 0) & (ky < kh)
    ix = jnp.arange(wi)[:, None]
    ox = jnp.arange(wo)[None, :]
    kx = ox + padding - stride * ix                      # (wi, wo)
    vx = (kx >= 0) & (kx < kw)

    m = w_torch[:, :, jnp.clip(ky, 0, kh - 1), :]        # (cin, cout, hi, ho, kw)
    m = m[:, :, :, :, jnp.clip(kx, 0, kw - 1)]           # (cin, cout, hi, ho, wi, wo)
    mask = (vy[:, :, None, None] & vx[None, None, :, :]).astype(w_torch.dtype)
    m = m * mask[None, None]
    if channel_fastest_cols:
        m = jnp.transpose(m, (2, 4, 0, 3, 5, 1))         # (hi, wi, cin, ho, wo, cout)
    else:
        m = jnp.transpose(m, (2, 4, 0, 1, 3, 5))         # (hi, wi, cin, cout, ho, wo)
    return m.reshape(hi * wi * cin, ho * wo * cout), (ho, wo)


def _prepare_pallas_operands(params):
    """Constant per-layer kernel operands (dense conv matrices, BN selector/broadcaster)."""
    hi = wi = 1
    flat = []
    has_bn = []
    hw_per_layer = []
    n_layers = len(params)
    for li, layer in enumerate(params):
        is_last = li == n_layers - 1
        wm, (ho, wo) = _deconv_dense_matrix(
            layer['w'], layer['stride'], layer['padding'], hi, wi,
            channel_fastest_cols=not is_last)
        flat.append(wm)
        has_bn.append(bool(layer['bn']))
        hw_per_layer.append(ho * wo)
        if layer['bn']:
            c = layer['cout']
            sel = jnp.tile(jnp.eye(c, dtype=jnp.float32), (ho * wo, 1))  # (HWC, C)
            flat += [layer['gamma'], layer['beta'], sel, sel.T]
        hi, wi = ho, wo
    out_meta = (params[-1]['cout'], hi, wi)
    return flat, tuple(has_bn), tuple(hw_per_layer), out_meta


# --------------------------------------------------------------------------------------
# Parameter construction (mirrors Generator.__init__), deterministic init
# --------------------------------------------------------------------------------------
def build_generator_params(key, ns_size, final_depth, out_size, out_depth, n_add=0):
    assert out_size % 16 == 0, 'output size must be divided by 16'
    tmp, first_depth = 4, final_depth
    while tmp < out_size // 2:
        tmp *= 2
        first_depth *= 2

    plan = [dict(cin=ns_size, cout=first_depth, stride=1, padding=0, bn=True)]      # pro
    prev_depth, prev_size = first_depth, 4
    while prev_size < out_size // 2:                                                 # exp%d
        plan.append(dict(cin=prev_depth, cout=prev_depth // 2, stride=2, padding=1, bn=True))
        prev_depth //= 2
        prev_size *= 2
    # TODO(synk): n_add > 0 adds 3x3 Conv2d+BN blocks (the torch code's BN channel count is
    # inconsistent in that branch); not instantiated here since n_add defaults to 0.
    assert n_add == 0
    plan.append(dict(cin=prev_depth, cout=out_depth, stride=2, padding=1, bn=False))  # out

    params = []
    for cfg in plan:
        key, wk = jax.random.split(key)
        w = 0.02 * jax.random.normal(wk, (cfg['cin'], cfg['cout'], K, K), jnp.float32)
        gamma = jnp.ones((1, cfg['cout']), jnp.float32)   # torch BatchNorm default init
        beta = jnp.zeros((1, cfg['cout']), jnp.float32)
        params.append(dict(w=w, gamma=gamma, beta=beta, **cfg))
    return params


def generator_forward(params, z_nchw):
    """z_nchw: (N, ns_size, 1, 1) like the PyTorch module. Returns NCHW output."""
    n = z_nchw.shape[0]
    flat, has_bn, hws, (c_out, h_out, w_out) = _prepare_pallas_operands(params)
    # (N, ns, 1, 1) -> (N, ns): row ordering (iy, ix, ci) expected by the dense matrices.
    z2d = jnp.transpose(z_nchw.astype(jnp.float32), (0, 2, 3, 1)).reshape(n, -1)
    inv_cnt = tuple(1.0 / float(n * hw) for hw in hws)    # BN divisors (static floats)

    kernel = functools.partial(_generator_kernel,
                               layer_has_bn=has_bn, layer_inv_cnt=inv_cnt)
    out_flat = pl.pallas_call(
        kernel,
        out_shape=jax.ShapeDtypeStruct((n, c_out * h_out * w_out), jnp.float32),
        in_specs=[pl.BlockSpec(memory_space=pltpu.MemorySpace.VMEM)] * (1 + len(flat)),
        out_specs=pl.BlockSpec(memory_space=pltpu.MemorySpace.VMEM),
    )(z2d, *flat)
    # Final layer's columns are (c, h, w) -> direct NCHW reshape, no transpose needed.
    return out_flat.reshape(n, c_out, h_out, w_out)


# --------------------------------------------------------------------------------------
# Pure-JAX reference (lax conv) for a sanity check of the Pallas kernel
# --------------------------------------------------------------------------------------
def reference_forward(params, z_nchw):
    x = z_nchw.astype(jnp.float32)
    for layer in params:
        w = layer['w']                                            # (Cin, Cout, K, K)
        w_oihw = jnp.transpose(w, (1, 0, 2, 3))[:, :, ::-1, ::-1]
        pad = K - 1 - layer['padding']
        y = jax.lax.conv_general_dilated(
            x, w_oihw, window_strides=(1, 1),
            padding=[(pad, pad), (pad, pad)],
            lhs_dilation=(layer['stride'], layer['stride']),
            dimension_numbers=('NCHW', 'OIHW', 'NCHW'))
        if layer['bn']:
            mean = jnp.mean(y, axis=(0, 2, 3), keepdims=True)
            var = jnp.mean((y - mean) ** 2, axis=(0, 2, 3), keepdims=True)
            y = (y - mean) / jnp.sqrt(var + BN_EPS)
            y = y * layer['gamma'].reshape(1, -1, 1, 1) + layer['beta'].reshape(1, -1, 1, 1)
        x = jnp.maximum(y, 0.0)
    return x


if __name__ == "__main__":
    key = jax.random.PRNGKey(0)
    kp, kz = jax.random.split(key)

    ns_size, final_depth, out_size, out_depth = 8, 8, 16, 3
    batch = 2

    params = build_generator_params(kp, ns_size, final_depth, out_size, out_depth, n_add=0)
    z = jax.random.normal(kz, (batch, ns_size, 1, 1), jnp.float32)  # NCHW noise, like PyTorch

    out = jax.block_until_ready(generator_forward(params, z))
    assert out.shape == (batch, out_depth, out_size, out_size), out.shape

    ref = jax.block_until_ready(reference_forward(params, z))
    max_err = float(jnp.max(jnp.abs(out - ref)))
    scale = max(1.0, float(jnp.max(jnp.abs(ref))))
    assert max_err <= 1e-2 * scale, f"mismatch vs reference: max_err={max_err}"

    print("KERNEL_OK")
</pallas_src>

<mosaic_0001>
module attributes {stable_mosaic.version = 11 : i64} {
  func.func @_generator_kernel(%arg0: memref<2x8xf32, #tpu.memory_space<vmem>>, %arg1: memref<8x256xf32, #tpu.memory_space<vmem>>, %arg2: memref<1x16xf32, #tpu.memory_space<vmem>>, %arg3: memref<1x16xf32, #tpu.memory_space<vmem>>, %arg4: memref<256x16xf32, #tpu.memory_space<vmem>>, %arg5: memref<16x256xf32, #tpu.memory_space<vmem>>, %arg6: memref<256x512xf32, #tpu.memory_space<vmem>>, %arg7: memref<1x8xf32, #tpu.memory_space<vmem>>, %arg8: memref<1x8xf32, #tpu.memory_space<vmem>>, %arg9: memref<512x8xf32, #tpu.memory_space<vmem>>, %arg10: memref<8x512xf32, #tpu.memory_space<vmem>>, %arg11: memref<512x768xf32, #tpu.memory_space<vmem>>, %arg12: memref<2x768xf32, #tpu.memory_space<vmem>>) attributes {dimension_semantics = [], scalar_prefetch = 0 : i64, scratch_operands = 0 : i64, tpu.core_type = #tpu.core_type<tc>} {
    %c0 = arith.constant 0 : index
    %c0_0 = arith.constant 0 : index
    %0 = vector.load %arg0[%c0, %c0_0] : memref<2x8xf32, #tpu.memory_space<vmem>>, vector<2x8xf32>
    %c0_1 = arith.constant 0 : index
    %c0_2 = arith.constant 0 : index
    %1 = vector.load %arg1[%c0_1, %c0_2] : memref<8x256xf32, #tpu.memory_space<vmem>>, vector<8x256xf32>
    %cst = arith.constant dense<0.000000e+00> : vector<2x256xf32>
    %2 = tpu.matmul %0, %1, %cst {dimension_numbers = #tpu.dot_dimension_numbers<[1], [0], [0], [1], [0, 0, 1, 1], [], []>} : vector<2x8xf32>, vector<8x256xf32>, vector<2x256xf32> -> vector<2x256xf32>
    %c0_3 = arith.constant 0 : index
    %c0_4 = arith.constant 0 : index
    %3 = vector.load %arg4[%c0_3, %c0_4] : memref<256x16xf32, #tpu.memory_space<vmem>>, vector<256x16xf32>
    %cst_5 = arith.constant dense<0.000000e+00> : vector<256xf32>
    %4 = vector.multi_reduction <add>, %2, %cst_5 [0] : vector<2x256xf32> to vector<256xf32>
    %5 = vector.shape_cast %4 : vector<256xf32> to vector<1x256xf32>
    %6 = arith.mulf %2, %2 : vector<2x256xf32>
    %cst_6 = arith.constant dense<0.000000e+00> : vector<256xf32>
    %7 = vector.multi_reduction <add>, %6, %cst_6 [0] : vector<2x256xf32> to vector<256xf32>
    %8 = vector.shape_cast %7 : vector<256xf32> to vector<1x256xf32>
    %cst_7 = arith.constant dense<0.000000e+00> : vector<1x16xf32>
    %9 = tpu.matmul %5, %3, %cst_7 {dimension_numbers = #tpu.dot_dimension_numbers<[1], [0], [0], [1], [0, 0, 1, 1], [], []>} : vector<1x256xf32>, vector<256x16xf32>, vector<1x16xf32> -> vector<1x16xf32>
    %cst_8 = arith.constant dense<0.000000e+00> : vector<1x16xf32>
    %10 = tpu.matmul %8, %3, %cst_8 {dimension_numbers = #tpu.dot_dimension_numbers<[1], [0], [0], [1], [0, 0, 1, 1], [], []>} : vector<1x256xf32>, vector<256x16xf32>, vector<1x16xf32> -> vector<1x16xf32>
    %cst_9 = arith.constant 3.125000e-02 : f32
    %11 = vector.broadcast %cst_9 : f32 to vector<1x16xf32>
    %12 = arith.mulf %9, %11 : vector<1x16xf32>
    %cst_10 = arith.constant 3.125000e-02 : f32
    %13 = vector.broadcast %cst_10 : f32 to vector<1x16xf32>
    %14 = arith.mulf %10, %13 : vector<1x16xf32>
    %15 = arith.mulf %12, %12 : vector<1x16xf32>
    %16 = arith.subf %14, %15 : vector<1x16xf32>
    %c0_11 = arith.constant 0 : index
    %c0_12 = arith.constant 0 : index
    %17 = vector.load %arg2[%c0_11, %c0_12] : memref<1x16xf32, #tpu.memory_space<vmem>>, vector<1x16xf32>
    %cst_13 = arith.constant 9.99999974E-6 : f32
    %18 = vector.broadcast %cst_13 : f32 to vector<1x16xf32>
    %19 = arith.addf %16, %18 : vector<1x16xf32>
    %20 = math.rsqrt %19 : vector<1x16xf32>
    %21 = arith.mulf %17, %20 : vector<1x16xf32>
    %c0_14 = arith.constant 0 : index
    %c0_15 = arith.constant 0 : index
    %22 = vector.load %arg3[%c0_14, %c0_15] : memref<1x16xf32, #tpu.memory_space<vmem>>, vector<1x16xf32>
    %23 = arith.mulf %12, %21 : vector<1x16xf32>
    %24 = arith.subf %22, %23 : vector<1x16xf32>
    %c0_16 = arith.constant 0 : index
    %c0_17 = arith.constant 0 : index
    %25 = vector.load %arg5[%c0_16, %c0_17] : memref<16x256xf32, #tpu.memory_space<vmem>>, vector<16x256xf32>
    %cst_18 = arith.constant dense<0.000000e+00> : vector<1x256xf32>
    %26 = tpu.matmul %21, %25, %cst_18 {dimension_numbers = #tpu.dot_dimension_numbers<[1], [0], [0], [1], [0, 0, 1, 1], [], []>} : vector<1x16xf32>, vector<16x256xf32>, vector<1x256xf32> -> vector<1x256xf32>
    %27 = vector.broadcast %26 : vector<1x256xf32> to vector<2x256xf32>
    %28 = arith.mulf %2, %27 : vector<2x256xf32>
    %cst_19 = arith.constant dense<0.000000e+00> : vector<1x256xf32>
    %29 = tpu.matmul %24, %25, %cst_19 {dimension_numbers = #tpu.dot_dimension_numbers<[1], [0], [0], [1], [0, 0, 1, 1], [], []>} : vector<1x16xf32>, vector<16x256xf32>, vector<1x256xf32> -> vector<1x256xf32>
    %30 = vector.broadcast %29 : vector<1x256xf32> to vector<2x256xf32>
    %31 = arith.addf %28, %30 : vector<2x256xf32>
    %cst_20 = arith.constant 0.000000e+00 : f32
    %32 = vector.broadcast %cst_20 : f32 to vector<2x256xf32>
    %33 = arith.maximumf %31, %32 : vector<2x256xf32>
    %c0_21 = arith.constant 0 : index
    %c0_22 = arith.constant 0 : index
    %34 = vector.load %arg6[%c0_21, %c0_22] : memref<256x512xf32, #tpu.memory_space<vmem>>, vector<256x512xf32>
    %cst_23 = arith.constant dense<0.000000e+00> : vector<2x512xf32>
    %35 = tpu.matmul %33, %34, %cst_23 {dimension_numbers = #tpu.dot_dimension_numbers<[1], [0], [0], [1], [0, 0, 1, 1], [], []>} : vector<2x256xf32>, vector<256x512xf32>, vector<2x512xf32> -> vector<2x512xf32>
    %c0_24 = arith.constant 0 : index
    %c0_25 = arith.constant 0 : index
    %36 = vector.load %arg9[%c0_24, %c0_25] : memref<512x8xf32, #tpu.memory_space<vmem>>, vector<512x8xf32>
    %cst_26 = arith.constant dense<0.000000e+00> : vector<512xf32>
    %37 = vector.multi_reduction <add>, %35, %cst_26 [0] : vector<2x512xf32> to vector<512xf32>
    %38 = vector.shape_cast %37 : vector<512xf32> to vector<1x512xf32>
    %39 = arith.mulf %35, %35 : vector<2x512xf32>
    %cst_27 = arith.constant dense<0.000000e+00> : vector<512xf32>
    %40 = vector.multi_reduction <add>, %39, %cst_27 [0] : vector<2x512xf32> to vector<512xf32>
    %41 = vector.shape_cast %40 : vector<512xf32> to vector<1x512xf32>
    %cst_28 = arith.constant dense<0.000000e+00> : vector<1x8xf32>
    %42 = tpu.matmul %38, %36, %cst_28 {dimension_numbers = #tpu.dot_dimension_numbers<[1], [0], [0], [1], [0, 0, 1, 1], [], []>} : vector<1x512xf32>, vector<512x8xf32>, vector<1x8xf32> -> vector<1x8xf32>
    %cst_29 = arith.constant dense<0.000000e+00> : vector<1x8xf32>
    %43 = tpu.matmul %41, %36, %cst_29 {dimension_numbers = #tpu.dot_dimension_numbers<[1], [0], [0], [1], [0, 0, 1, 1], [], []>} : vector<1x512xf32>, vector<512x8xf32>, vector<1x8xf32> -> vector<1x8xf32>
    %cst_30 = arith.constant 7.812500e-03 : f32
    %44 = vector.broadcast %cst_30 : f32 to vector<1x8xf32>
    %45 = arith.mulf %42, %44 : vector<1x8xf32>
    %cst_31 = arith.constant 7.812500e-03 : f32
    %46 = vector.broadcast %cst_31 : f32 to vector<1x8xf32>
    %47 = arith.mulf %43, %46 : vector<1x8xf32>
    %48 = arith.mulf %45, %45 : vector<1x8xf32>
    %49 = arith.subf %47, %48 : vector<1x8xf32>
    %c0_32 = arith.constant 0 : index
    %c0_33 = arith.constant 0 : index
    %50 = vector.load %arg7[%c0_32, %c0_33] : memref<1x8xf32, #tpu.memory_space<vmem>>, vector<1x8xf32>
    %cst_34 = arith.constant 9.99999974E-6 : f32
    %51 = vector.broadcast %cst_34 : f32 to vector<1x8xf32>
    %52 = arith.addf %49, %51 : vector<1x8xf32>
    %53 = math.rsqrt %52 : vector<1x8xf32>
    %54 = arith.mulf %50, %53 : vector<1x8xf32>
    %c0_35 = arith.constant 0 : index
    %c0_36 = arith.constant 0 : index
    %55 = vector.load %arg8[%c0_35, %c0_36] : memref<1x8xf32, #tpu.memory_space<vmem>>, vector<1x8xf32>
    %56 = arith.mulf %45, %54 : vector<1x8xf32>
    %57 = arith.subf %55, %56 : vector<1x8xf32>
    %c0_37 = arith.constant 0 : index
    %c0_38 = arith.constant 0 : index
    %58 = vector.load %arg10[%c0_37, %c0_38] : memref<8x512xf32, #tpu.memory_space<vmem>>, vector<8x512xf32>
    %cst_39 = arith.constant dense<0.000000e+00> : vector<1x512xf32>
    %59 = tpu.matmul %54, %58, %cst_39 {dimension_numbers = #tpu.dot_dimension_numbers<[1], [0], [0], [1], [0, 0, 1, 1], [], []>} : vector<1x8xf32>, vector<8x512xf32>, vector<1x512xf32> -> vector<1x512xf32>
    %60 = vector.broadcast %59 : vector<1x512xf32> to vector<2x512xf32>
    %61 = arith.mulf %35, %60 : vector<2x512xf32>
    %cst_40 = arith.constant dense<0.000000e+00> : vector<1x512xf32>
    %62 = tpu.matmul %57, %58, %cst_40 {dimension_numbers = #tpu.dot_dimension_numbers<[1], [0], [0], [1], [0, 0, 1, 1], [], []>} : vector<1x8xf32>, vector<8x512xf32>, vector<1x512xf32> -> vector<1x512xf32>
    %63 = vector.broadcast %62 : vector<1x512xf32> to vector<2x512xf32>
    %64 = arith.addf %61, %63 : vector<2x512xf32>
    %cst_41 = arith.constant 0.000000e+00 : f32
    %65 = vector.broadcast %cst_41 : f32 to vector<2x512xf32>
    %66 = arith.maximumf %64, %65 : vector<2x512xf32>
    %c0_42 = arith.constant 0 : index
    %c0_43 = arith.constant 0 : index
    %67 = vector.load %arg11[%c0_42, %c0_43] : memref<512x768xf32, #tpu.memory_space<vmem>>, vector<512x768xf32>
    %cst_44 = arith.constant dense<0.000000e+00> : vector<2x768xf32>
    %68 = tpu.matmul %66, %67, %cst_44 {dimension_numbers = #tpu.dot_dimension_numbers<[1], [0], [0], [1], [0, 0, 1, 1], [], []>} : vector<2x512xf32>, vector<512x768xf32>, vector<2x768xf32> -> vector<2x768xf32>
    %cst_45 = arith.constant 0.000000e+00 : f32
    %69 = vector.broadcast %cst_45 : f32 to vector<2x768xf32>
    %70 = arith.maximumf %68, %69 : vector<2x768xf32>
    %c0_46 = arith.constant 0 : index
    %c0_47 = arith.constant 0 : index
    %71 = vector.load %arg12[%c0_46, %c0_47] : memref<2x768xf32, #tpu.memory_space<vmem>>, vector<2x768xf32>
    tpu.vector_store %arg12[%c0_46, %c0_47], %70 {strides = array<i32>} : memref<2x768xf32, #tpu.memory_space<vmem>>, vector<2x768xf32>,
    return
  }
}

</mosaic_0001>

<bundles_post_ra>
// kernel: tpu_custom_call.1
= control target key start
LH: loop header
LB: loop body
LE: loop exit
PB: predicated region body
PF: predicated region fallthrough
CT: control target
= control target key end

     0   :  { %17 = vsyncpa [#allocation3], 0  ;;  %s3204_s0 = inlined_call_operand.hbm [shape: f32[2,8], index: 0, kind: input, shape index: {}]   ;;  %s3205_s1 = inlined_call_operand.hbm [shape: f32[8,256], index: 1, kind: input, shape index: {}]   ;;  %s3206_s2 = inlined_call_operand.hbm [shape: f32[1,16], index: 2, kind: input, shape index: {}]   ;;  %s3207_s3 = inlined_call_operand.hbm [shape: f32[1,16], index: 3, kind: input, shape index: {}]   ;;  %s3208_s4 = inlined_call_operand.vmem [shape: f32[256,16], index: 4, kind: input, shape index: {}]   ;;  %s3209_s5 = inlined_call_operand.hbm [shape: f32[16,256], index: 5, kind: input, shape index: {}]   ;;  %s3210_s6 = inlined_call_operand.hbm [shape: f32[256,512], index: 6, kind: input, shape index: {}]   ;;  %s3211_s7 = inlined_call_operand.hbm [shape: f32[1,8], index: 7, kind: input, shape index: {}]   ;;  %s3212_s8 = inlined_call_operand.hbm [shape: f32[1,8], index: 8, kind: input, shape index: {}]   ;;  %s3213_s9 = inlined_call_operand.vmem [shape: f32[512,8], index: 9, kind: input, shape index: {}]   ;;  %s3214_s10 = inlined_call_operand.hbm [shape: f32[8,512], index: 10, kind: input, shape index: {}]   ;;  %s3215_s11 = inlined_call_operand.hbm [shape: f32[512,768], index: 11, kind: input, shape index: {}]   ;;  %s3216_s12 = inlined_call_operand.hbm [shape: f32[2,768], index: 12, kind: output, shape index: {}]  }
   0x1   :  { %18 = vsyncpa [#allocation6], 0 }
   0x2   :  { %19 = vsyncpa [#allocation9], 0 }
   0x3   :  { %20 = vsyncpa [#allocation12], 0 }
   0x4   :  { %21 = vsyncpa [#allocation15], 0 }
   0x5   :  { %22 = vsyncpa [#allocation18], 0  ;;  %s40_s23 = sshll.u32 %s3205_s1, 4  ;;  %s41_s23 = int_to_ptr.hbm [resolvable:$true] %s40_s23 }
   0x6   :  { %23 = vsyncpa [#allocation4], 0  ;;  %s2502_s24 = smov [#allocation5]   ;;  %s62_s28 = sshll.u32 %s3207_s3, 4  ;;  %s63_s28 = int_to_ptr.hbm [resolvable:$true] %s62_s28 }
   0x7   :  { %s42_s25 = sshll.u32 %s2502_s24, 4  ;;  %s2503_s29 = smov [#allocation8]   ;;  %s43_s25 = int_to_ptr.vmem [resolvable:$true] %s42_s25 }
   0x8   :  { %45 = dma.hbm_to_vmem [thread:$0]  %s41_s23, 256, %s43_s25, [#allocation6]  }
   0x9   :  { %s64_s30 = sshll.u32 %s2503_s29, 4  ;;  %s87_s15 = sshll.u32 %s3210_s6, 4  ;;  %s65_s30 = int_to_ptr.vmem [resolvable:$true] %s64_s30  ;;  %s88_s15 = int_to_ptr.hbm [resolvable:$true] %s87_s15 }
   0xa   :  { %67 = dma.hbm_to_vmem [thread:$0]  %s63_s28, 16, %s65_s30, [#allocation9]  }
   0xb   :  { %s2504_s1 = smov [#allocation11]   ;;  %s112_s19 = sshll.u32 %s3212_s8, 4  ;;  %s113_s19 = int_to_ptr.hbm [resolvable:$true] %s112_s19 }
   0xc   :  { %s89_s16 = sshll.u32 %s2504_s1, 4  ;;  %s2505_s20 = smov 512   ;;  %s90_s16 = int_to_ptr.vmem [resolvable:$true] %s89_s16 }
   0xd   :  { %s2506_s3 = smov 32   ;;  %s2507_s21 = smov [#allocation14]  }
   0xe   :  { %95 = dma.hbm_to_vmem [thread:$0]  %s88_s15, 16384, %s90_s16, [#allocation12], %s2505_s20, %s2505_s20, %s2506_s3  }
   0xf   :  { %s114_s22 = sshll.u32 %s2507_s21, 4  ;;  %s29_s6 = sshll.u32 %s3204_s0, 4  ;;  %s115_s22 = int_to_ptr.vmem [resolvable:$true] %s114_s22  ;;  %s30_s6 = int_to_ptr.hbm [resolvable:$true] %s29_s6 }
  0x10   :  { %117 = dma.hbm_to_vmem [thread:$0]  %s113_s19, 16, %s115_s22, [#allocation15]  }
  0x11   :  { %s51_s27 = sshll.u32 %s3206_s2, 4  ;;  %s2508_s28 = smov [#allocation2]   ;;  %s52_s27 = int_to_ptr.hbm [resolvable:$true] %s51_s27 }
  0x12   :  { %s31_s29 = sshll.u32 %s2508_s28, 4  ;;  %s2509_s8 = smov [#allocation7]   ;;  %s32_s29 = int_to_ptr.vmem [resolvable:$true] %s31_s29 }
  0x13   :  { %34 = dma.hbm_to_vmem [thread:$0]  %s30_s6, 32, %s32_s29, [#allocation3]  }
  0x14   :  { %s53_s30 = sshll.u32 %s2509_s8, 4  ;;  %s74_s15 = sshll.u32 %s3209_s5, 4  ;;  %s54_s30 = int_to_ptr.vmem [resolvable:$true] %s53_s30  ;;  %s75_s15 = int_to_ptr.hbm [resolvable:$true] %s74_s15 }
  0x15   :  { %56 = dma.hbm_to_vmem [thread:$0]  %s52_s27, 16, %s54_s30, [#allocation6]  }
  0x16   :  { %s2510_s0 = smov [#allocation10]   ;;  %s101_s2 = sshll.u32 %s3211_s7, 4  ;;  %s102_s2 = int_to_ptr.hbm [resolvable:$true] %s101_s2 }
  0x17   :  { %s76_s1 = sshll.u32 %s2510_s0, 4  ;;  %s2511_s18 = smov 256   ;;  %s77_s1 = int_to_ptr.vmem [resolvable:$true] %s76_s1 }
  0x18   :  { %s2512_s19 = smov 16   ;;  %s2513_s20 = smov [#allocation13]  }
  0x19   :  { %82 = dma.hbm_to_vmem [thread:$0]  %s75_s15, 512, %s77_s1, [#allocation9], %s2511_s18, %s2511_s18, %s2512_s19  }
  0x1a   :  { %s103_s3 = sshll.u32 %s2513_s20, 4  ;;  %s125_s5 = sshll.u32 %s3214_s10, 4  ;;  %s104_s3 = int_to_ptr.vmem [resolvable:$true] %s103_s3  ;;  %s126_s5 = int_to_ptr.hbm [resolvable:$true] %s125_s5 }
  0x1b   :  { %106 = dma.hbm_to_vmem [thread:$0]  %s102_s2, 16, %s104_s3, [#allocation12]  }
  0x1c   :  { %s135_s6 = sshll.u32 %s3215_s11, 4  ;;  %s2514_s25 = smov [#allocation16]   ;;  %s136_s6 = int_to_ptr.hbm [resolvable:$true] %s135_s6 }
  0x1d   :  { %s127_s26 = sshll.u32 %s2514_s25, 4  ;;  %s2515_s7 = smov [#allocation17]   ;;  %s128_s26 = int_to_ptr.vmem [resolvable:$true] %s127_s26 }
  0x1e   :  { %130 = dma.hbm_to_vmem [thread:$0]  %s126_s5, 512, %s128_s26, [#allocation15]  }
  0x1f   :  { %s137_s27 = sshll.u32 %s2515_s7, 4  ;;  %s2516_s28 = smov 768   ;;  %s138_s27 = int_to_ptr.vmem [resolvable:$true] %s137_s27 }
  0x20   :  { %s2517_s29 = smov 48  }
  0x21   :  { %143 = dma.hbm_to_vmem [thread:$0]  %s136_s6, 49152, %s138_s27, [#allocation18], %s2516_s28, %s2516_s28, %s2517_s29  }
  0x22   :  { %2488 = dma.done.wait [#allocation3], 32  }
  0x23   :  { %2489 = vsyncadd [#allocation3], 4294967264 }
  0x24   :  { %2490 = dma.done.wait [#allocation6], 272  }
  0x25   :  { %2491 = vsyncadd [#allocation6], 4294967024 }
  0x26   :  { %2492 = dma.done.wait [#allocation9], 528  }
  0x27   :  { %2493 = vsyncadd [#allocation9], 4294966768 }
  0x28   :  { %2494 = dma.done.wait [#allocation12], 16400  }
  0x29   :  { %2495 = vsyncadd [#allocation12], 4294950896 }
  0x2a   :  { %2496 = dma.done.wait [#allocation15], 528  }
  0x2b   :  { %2497 = vsyncadd [#allocation15], 4294966768 }
  0x2c   :  { %2498 = dma.done.wait [#allocation18], 49152  }
  0x2d   :  { %2499 = vsyncadd [#allocation18], 4294918144  ;;  %vm187_vm0 = vcmask 64512   ;;  %v185_v0 = vld [vmem:[#allocation5] sm:$0xff]  ;;  %v186_v1 = vld [vmem:[#allocation5 + $0x8] sm:$0xff]  ;;  %vm263_vm1 = vcmask 1041408  }
  0x2e   :  { %v184_v2 = vld [vmem:[#allocation2] sm:$0x3]  ;;  %206 = vmatpush.msra.mxu0 %v185_v0  ;;  %226 = vmatpush.msra.mxu1 %v186_v1  ;;  %v246_v3 = vld [vmem:[%s3208_s4 + $0x78] sm:$0xff]  ;;  %v245_v5 = vld [vmem:[%s3208_s4 + $0x70] sm:$0xff]  ;;  %vm398_vm5 = vcmask 130048   ;;  %vm2158_vm9 = vcmask 1045508  }
  0x2f   :  { %v262_v4 = vld [vmem:[%s3208_s4 + $0xf8] sm:$0xff]  ;;  %2189 = vmatmul.msk.f32.vlgmr.msra.gmra.mxu0 %vm187_vm0, %v184_v2  ;;  %2190 = vmatmul.msk.f32.vlgmr.msra.gmra.mxu1 %vm187_vm0, %v184_v2  ;;  %v261_v6 = vld [vmem:[%s3208_s4 + $0xf0] sm:$0xff]  ;;  %v244_v7 = vld [vmem:[%s3208_s4 + $0x68] sm:$0xff]  ;;  %vm2160_vm10 = vcmask 1043456   ;;  %s2174_s25 = sshll.u32 %s3216_s12, 4  ;;  %s2175_s25 = int_to_ptr.hbm [resolvable:$true] %s2174_s25 }
  0x30   :  { %294 = vmatpush.msra.mxu2 %v246_v3  ;;  %314 = vmatpush.msra.mxu3 %v262_v4  ;;  %v260_v8 = vld [vmem:[%s3208_s4 + $0xe8] sm:$0xff]  ;;  %v243_v9 = vld [vmem:[%s3208_s4 + $0x60] sm:$0xff]  ;;  %v242_v11 = vld [vmem:[%s3208_s4 + $0x58] sm:$0xff] }
  0x31   :  { %334 = vmatpush.msrb.mxu0 %v246_v3  ;;  %354 = vmatpush.msrb.mxu1 %v262_v4  ;;  %v259_v10 = vld [vmem:[%s3208_s4 + $0xe0] sm:$0xff]  ;;  %v258_v12 = vld [vmem:[%s3208_s4 + $0xd8] sm:$0xff]  ;;  %v241_v13 = vld [vmem:[%s3208_s4 + $0x50] sm:$0xff] }
  0x32   :  { %295 = vmatpush.msra.mxu2 %v245_v5  ;;  %315 = vmatpush.msra.mxu3 %v261_v6  ;;  %v257_v14 = vld [vmem:[%s3208_s4 + $0xd0] sm:$0xff]  ;;  %v240_v15 = vld [vmem:[%s3208_s4 + $0x48] sm:$0xff]  ;;  %v239_v17 = vld [vmem:[%s3208_s4 + $0x40] sm:$0xff] }
  0x33   :  { %335 = vmatpush.msrb.mxu0 %v245_v5  ;;  %355 = vmatpush.msrb.mxu1 %v261_v6  ;;  %v256_v16 = vld [vmem:[%s3208_s4 + $0xc8] sm:$0xff]  ;;  %v255_v18 = vld [vmem:[%s3208_s4 + $0xc0] sm:$0xff]  ;;  %v238_v19 = vld [vmem:[%s3208_s4 + $0x38] sm:$0xff] }
  0x34   :  { %296 = vmatpush.msra.mxu2 %v244_v7  ;;  %316 = vmatpush.msra.mxu3 %v260_v8  ;;  %v254_v20 = vld [vmem:[%s3208_s4 + $0xb8] sm:$0xff]  ;;  %v237_v21 = vld [vmem:[%s3208_s4 + $0x30] sm:$0xff]  ;;  %v236_v23 = vld [vmem:[%s3208_s4 + $0x28] sm:$0xff] }
  0x35   :  { %336 = vmatpush.msrb.mxu0 %v244_v7  ;;  %356 = vmatpush.msrb.mxu1 %v260_v8  ;;  %v253_v22 = vld [vmem:[%s3208_s4 + $0xb0] sm:$0xff]  ;;  %v252_v24 = vld [vmem:[%s3208_s4 + $0xa8] sm:$0xff]  ;;  %v235_v25 = vld [vmem:[%s3208_s4 + $0x20] sm:$0xff] }
  0x36   :  { %297 = vmatpush.msra.mxu2 %v243_v9  ;;  %317 = vmatpush.msra.mxu3 %v259_v10  ;;  %v251_v26 = vld [vmem:[%s3208_s4 + $0xa0] sm:$0xff]  ;;  %v234_v27 = vld [vmem:[%s3208_s4 + $0x18] sm:$0xff]  ;;  %v233_v29 = vld [vmem:[%s3208_s4 + $0x10] sm:$0xff] }
  0x37   :  { %337 = vmatpush.msrb.mxu0 %v243_v9  ;;  %357 = vmatpush.msrb.mxu1 %v259_v10  ;;  %v250_v28 = vld [vmem:[%s3208_s4 + $0x98] sm:$0xff]  ;;  %v249_v30 = vld [vmem:[%s3208_s4 + $0x90] sm:$0xff]  ;;  %v232_v31 = vld [vmem:[%s3208_s4 + $0x8] sm:$0xff] }
  0x38   :  { %298 = vmatpush.msra.mxu2 %v242_v11  ;;  %318 = vmatpush.msra.mxu3 %v258_v12  ;;  %v248_v32 = vld [vmem:[%s3208_s4 + $0x88] sm:$0xff]  ;;  %v231_v33 = vld [vmem:[%s3208_s4] sm:$0xff]  ;;  %v394_v5 = vld [vmem:[#allocation10] sm:$0xff] }
  0x39   :  { %338 = vmatpush.msrb.mxu0 %v242_v11  ;;  %358 = vmatpush.msrb.mxu1 %v258_v12  ;;  %v247_v34 = vld [vmem:[%s3208_s4 + $0x80] sm:$0xff]  ;;  %v397_v4 = vld [vmem:[#allocation10 + $0x18] sm:$0xff] }
  0x3a   :  { %299 = vmatpush.msra.mxu2 %v241_v13  ;;  %319 = vmatpush.msra.mxu3 %v257_v14  ;;  %v396_v3 = vld [vmem:[#allocation10 + $0x10] sm:$0xff]  ;;  %v395_v6 = vld [vmem:[#allocation10 + $0x8] sm:$0xff] }
  0x3b   :  { %339 = vmatpush.msrb.mxu0 %v241_v13  ;;  %359 = vmatpush.msrb.mxu1 %v257_v14  ;;  %v555_v14 = vld [vmem:[#allocation11 + $0x1e0] sm:$0xff] }
  0x3c   :  { %300 = vmatpush.msra.mxu2 %v240_v15  ;;  %320 = vmatpush.msra.mxu3 %v256_v16 }
  0x3d   :  { %340 = vmatpush.msrb.mxu0 %v240_v15  ;;  %360 = vmatpush.msrb.mxu1 %v256_v16  ;;  %v619_v15 = vld [vmem:[#allocation11 + $0x3e0] sm:$0xff]  ;;  %v556_v16 = vld [vmem:[#allocation11 + $0x1e8] sm:$0xff] }
  0x3e   :  { %301 = vmatpush.msra.mxu2 %v239_v17  ;;  %321 = vmatpush.msra.mxu3 %v255_v18 }
  0x3f   :  { %341 = vmatpush.msrb.mxu0 %v239_v17  ;;  %361 = vmatpush.msrb.mxu1 %v255_v18  ;;  %v620_v17 = vld [vmem:[#allocation11 + $0x3e8] sm:$0xff]  ;;  %v551_v18 = vld [vmem:[#allocation11 + $0x1c0] sm:$0xff] }
  0x40   :  { %302 = vmatpush.msra.mxu2 %v238_v19  ;;  %322 = vmatpush.msra.mxu3 %v254_v20 }
  0x41   :  { %342 = vmatpush.msrb.mxu0 %v238_v19  ;;  %362 = vmatpush.msrb.mxu1 %v254_v20  ;;  %v615_v19 = vld [vmem:[#allocation11 + $0x3c0] sm:$0xff] }
  0x42   :  { %303 = vmatpush.msra.mxu2 %v237_v21  ;;  %323 = vmatpush.msra.mxu3 %v253_v22 }
  0x43   :  { %343 = vmatpush.msrb.mxu0 %v237_v21  ;;  %363 = vmatpush.msrb.mxu1 %v253_v22  ;;  %v552_v22 = vld [vmem:[#allocation11 + $0x1c8] sm:$0xff] }
  0x44   :  { %304 = vmatpush.msra.mxu2 %v236_v23  ;;  %324 = vmatpush.msra.mxu3 %v252_v24 }
  0x45   :  { %344 = vmatpush.msrb.mxu0 %v236_v23  ;;  %364 = vmatpush.msrb.mxu1 %v252_v24  ;;  %v616_v23 = vld [vmem:[#allocation11 + $0x3c8] sm:$0xff]  ;;  %v547_v24 = vld [vmem:[#allocation11 + $0x1a0] sm:$0xff] }
  0x46   :  { %305 = vmatpush.msra.mxu2 %v235_v25  ;;  %325 = vmatpush.msra.mxu3 %v251_v26 }
  0x47   :  { %345 = vmatpush.msrb.mxu0 %v235_v25  ;;  %365 = vmatpush.msrb.mxu1 %v251_v26  ;;  %v611_v25 = vld [vmem:[#allocation11 + $0x3a0] sm:$0xff]  ;;  %v548_v26 = vld [vmem:[#allocation11 + $0x1a8] sm:$0xff] }
  0x48   :  { %306 = vmatpush.msra.mxu2 %v234_v27  ;;  %326 = vmatpush.msra.mxu3 %v250_v28 }
  0x49   :  { %346 = vmatpush.msrb.mxu0 %v234_v27  ;;  %366 = vmatpush.msrb.mxu1 %v250_v28  ;;  %v612_v27 = vld [vmem:[#allocation11 + $0x3a8] sm:$0xff] }
  0x4a   :  { %307 = vmatpush.msra.mxu2 %v233_v29  ;;  %327 = vmatpush.msra.mxu3 %v249_v30 }
  0x4b   :  { %347 = vmatpush.msrb.mxu0 %v233_v29  ;;  %367 = vmatpush.msrb.mxu1 %v249_v30  ;;  %v543_v29 = vld [vmem:[#allocation11 + $0x180] sm:$0xff] }
  0x4c   :  { %308 = vmatpush.msra.mxu2 %v232_v31  ;;  %328 = vmatpush.msra.mxu3 %v248_v32  ;;  %v607_v30 = vld [vmem:[#allocation11 + $0x380] sm:$0xff] }
  0x4d   :  { %348 = vmatpush.msrb.mxu0 %v232_v31  ;;  %368 = vmatpush.msrb.mxu1 %v248_v32  ;;  %v544_v31 = vld [vmem:[#allocation11 + $0x188] sm:$0xff] }
  0x4e   :  { %309 = vmatpush.msra.mxu2 %v231_v33  ;;  %329 = vmatpush.msra.mxu3 %v247_v34  ;;  %v608_v32 = vld [vmem:[#allocation11 + $0x388] sm:$0xff] }
  0x4f   :  { %349 = vmatpush.msrb.mxu0 %v231_v33  ;;  %369 = vmatpush.msrb.mxu1 %v247_v34  ;;  %v539_v34 = vld [vmem:[#allocation11 + $0x160] sm:$0xff] }
  0x50   :  { %416 = vmatpush.msrb.mxu2 %v396_v3  ;;  %436 = vmatpush.msrb.mxu3 %v397_v4 }
  0x51   :  { %463 = vmatpush.msra.mxu0 %v396_v3  ;;  %483 = vmatpush.msra.mxu1 %v397_v4  ;;  %v580_v3 = vld [vmem:[#allocation11 + $0x2a8] sm:$0xff]  ;;  %v511_v4 = vld [vmem:[#allocation11 + $0x80] sm:$0xff] }
  0x52   :  { %417 = vmatpush.msrb.mxu2 %v394_v5  ;;  %437 = vmatpush.msrb.mxu3 %v395_v6 }
  0x53   :  { %464 = vmatpush.msra.mxu0 %v394_v5  ;;  %484 = vmatpush.msra.mxu1 %v395_v6  ;;  %v575_v5 = vld [vmem:[#allocation11 + $0x280] sm:$0xff] }
  0xac   :  { %v2712_v35 = vpop.f32.mrf.mxu0  ;;  %v2714_v36 = vpop.f32.mrf.mxu1 }
  0xad   :  { %v264_v37 = vsel %vm263_vm1, %v2712_v35, 0.0  ;;  %v278_v38 = vmul.f32 %v2712_v35, %v2712_v35  ;;  %v271_v39 = vsel %vm263_vm1, %v2714_v36, 0.0  ;;  %v279_v40 = vmul.f32 %v2714_v36, %v2714_v36 }
  0xae   :  { %v265_v41 = vrot.slane %v264_v37, 4  ;;  %v272_v42 = vrot.slane %v271_v39, 4 }
  0xaf   :  { %v280_v43 = vsel %vm263_vm1, %v278_v38, 0.0  ;;  %v287_v44 = vsel %vm263_vm1, %v279_v40, 0.0  ;;  %v540_v38 = vld [vmem:[#allocation11 + $0x168] sm:$0xff]  ;;  %v535_v40 = vld [vmem:[#allocation11 + $0x140] sm:$0xff] }
  0xb0   :  { %v266_v45 = vadd.f32 %v265_v41, %v264_v37  ;;  %v281_v46 = vrot.slane %v280_v43, 4  ;;  %v273_v47 = vadd.f32 %v272_v42, %v271_v39  ;;  %v288_v48 = vrot.slane %v287_v44, 4  ;;  %v603_v37 = vld [vmem:[#allocation11 + $0x360] sm:$0xff]  ;;  %v604_v39 = vld [vmem:[#allocation11 + $0x368] sm:$0xff] }
  0xb1   :  { %v599_v41 = vld [vmem:[#allocation11 + $0x340] sm:$0xff]  ;;  %v536_v42 = vld [vmem:[#allocation11 + $0x148] sm:$0xff] }
  0xb2   :  { %v282_v49 = vadd.f32 %v281_v46, %v280_v43  ;;  %v289_v50 = vadd.f32 %v288_v48, %v287_v44  ;;  %v267_v51 = vrot.slane %v266_v45, 2  ;;  %v274_v52 = vrot.slane %v273_v47, 2  ;;  %v600_v43 = vld [vmem:[#allocation11 + $0x348] sm:$0xff]  ;;  %v531_v44 = vld [vmem:[#allocation11 + $0x120] sm:$0xff] }
  0xb3   :  { %v532_v46 = vld [vmem:[#allocation11 + $0x128] sm:$0xff]  ;;  %v527_v48 = vld [vmem:[#allocation11 + $0x100] sm:$0xff] }
  0xb4   :  { %v268_v53 = vadd.f32 %v267_v51, %v266_v45  ;;  %v275_v54 = vadd.f32 %v274_v52, %v273_v47  ;;  %v283_v55 = vrot.slane %v282_v49, 2  ;;  %v290_v56 = vrot.slane %v289_v50, 2  ;;  %v595_v45 = vld [vmem:[#allocation11 + $0x320] sm:$0xff]  ;;  %v596_v47 = vld [vmem:[#allocation11 + $0x328] sm:$0xff] }
  0xb5   :  { %v592_v51 = vld [vmem:[#allocation11 + $0x308] sm:$0xff] }
  0xb6   :  { %v269_v57 = vrot.slane %v268_v53, 1  ;;  %v276_v58 = vrot.slane %v275_v54, 1  ;;  %v284_v59 = vadd.f32 %v283_v55, %v282_v49  ;;  %v291_v60 = vadd.f32 %v290_v56, %v289_v50  ;;  %v591_v49 = vld [vmem:[#allocation11 + $0x300] sm:$0xff]  ;;  %v528_v50 = vld [vmem:[#allocation11 + $0x108] sm:$0xff] }
  0xb7   :  { %v524_v56 = vld [vmem:[#allocation11 + $0xe8] sm:$0xff] }
  0xb8   :  { %v270_v61 = vadd.f32 %v269_v57, %v268_v53  ;;  %v277_v62 = vadd.f32 %v276_v58, %v275_v54  ;;  %v285_v63 = vrot.slane %v284_v59, 1  ;;  %v292_v0 = vrot.slane %v291_v60, 1  ;;  %v523_v53 = vld [vmem:[#allocation11 + $0xe0] sm:$0xff]  ;;  %v588_v57 = vld [vmem:[#allocation11 + $0x2e8] sm:$0xff] }
  0xb9   :  { %v587_v54 = vld [vmem:[#allocation11 + $0x2e0] sm:$0xff] }
  0xba   :  { %310 = vmatmul.f32.vlgmr.msra.gmra.mxu2 %v270_v61  ;;  %330 = vmatmul.f32.vlgmr.msra.gmra.mxu3 %v277_v62  ;;  %v286_v1 = vadd.f32 %v285_v63, %v284_v59  ;;  %v293_v2 = vadd.f32 %v292_v0, %v291_v60  ;;  %v519_v58 = vld [vmem:[#allocation11 + $0xc0] sm:$0xff]  ;;  %v520_v61 = vld [vmem:[#allocation11 + $0xc8] sm:$0xff] }
  0xbb   :  { %623 = vmatpush.msra.mxu2 %v555_v14  ;;  %643 = vmatpush.msra.mxu3 %v619_v15  ;;  %v583_v59 = vld [vmem:[#allocation11 + $0x2c0] sm:$0xff]  ;;  %v584_v62 = vld [vmem:[#allocation11 + $0x2c8] sm:$0xff] }
  0xbc   :  { %350 = vmatmul.f32.vlgmr.msrb.gmra.mxu0 %v286_v1  ;;  %370 = vmatmul.f32.vlgmr.msrb.gmra.mxu1 %v293_v2  ;;  %v515_v63 = vld [vmem:[#allocation11 + $0xa0] sm:$0xff]  ;;  %v516_v2 = vld [vmem:[#allocation11 + $0xa8] sm:$0xff] }
  0xbd   :  { %663 = vmatpush.msrb.mxu0 %v556_v16  ;;  %683 = vmatpush.msrb.mxu1 %v620_v17  ;;  %v579_v0 = vld [vmem:[#allocation11 + $0x2a0] sm:$0xff]  ;;  %v508_v14 = vld [vmem:[#allocation11 + $0x68] sm:$0xff] }
  0xbe   :  { %624 = vmatpush.msra.mxu2 %v551_v18  ;;  %644 = vmatpush.msra.mxu3 %v615_v19  ;;  %v572_v15 = vld [vmem:[#allocation11 + $0x268] sm:$0xff]  ;;  %v503_v16 = vld [vmem:[#allocation11 + $0x40] sm:$0xff] }
  0xbf   :  { %664 = vmatpush.msrb.mxu0 %v552_v22  ;;  %684 = vmatpush.msrb.mxu1 %v616_v23  ;;  %v567_v17 = vld [vmem:[#allocation11 + $0x240] sm:$0xff]  ;;  %v391_v22 = vld [vmem:[#allocation8] sm:$0x1] }
  0xc0   :  { %625 = vmatpush.msra.mxu2 %v547_v24  ;;  %645 = vmatpush.msra.mxu3 %v611_v25  ;;  %v499_v23 = vld [vmem:[#allocation11 + $0x20] sm:$0xff] }
  0xc1   :  { %665 = vmatpush.msrb.mxu0 %v548_v26  ;;  %685 = vmatpush.msrb.mxu1 %v612_v27  ;;  %v563_v24 = vld [vmem:[#allocation11 + $0x220] sm:$0xff]  ;;  %v500_v26 = vld [vmem:[#allocation11 + $0x28] sm:$0xff] }
  0xc2   :  { %626 = vmatpush.msra.mxu2 %v543_v29  ;;  %646 = vmatpush.msra.mxu3 %v607_v30  ;;  %v564_v27 = vld [vmem:[#allocation11 + $0x228] sm:$0xff]  ;;  %v495_v29 = vld [vmem:[#allocation11] sm:$0xff] }
  0xc3   :  { %666 = vmatpush.msrb.mxu0 %v544_v31  ;;  %686 = vmatpush.msrb.mxu1 %v608_v32  ;;  %v559_v30 = vld [vmem:[#allocation11 + $0x200] sm:$0xff]  ;;  %v496_v31 = vld [vmem:[#allocation11 + $0x8] sm:$0xff] }
  0xc4   :  { %627 = vmatpush.msra.mxu2 %v539_v34  ;;  %647 = vmatpush.msra.mxu3 %v603_v37  ;;  %v560_v32 = vld [vmem:[#allocation11 + $0x208] sm:$0xff]  ;;  %v558_v34 = vld [vmem:[#allocation11 + $0x1f8] sm:$0xff] }
  0xc5   :  { %667 = vmatpush.msrb.mxu0 %v540_v38  ;;  %687 = vmatpush.msrb.mxu1 %v604_v39  ;;  %v622_v37 = vld [vmem:[#allocation11 + $0x3f8] sm:$0xff]  ;;  %v553_v38 = vld [vmem:[#allocation11 + $0x1d0] sm:$0xff] }
  0xc6   :  { %628 = vmatpush.msra.mxu2 %v535_v40  ;;  %648 = vmatpush.msra.mxu3 %v599_v41  ;;  %v617_v39 = vld [vmem:[#allocation11 + $0x3d0] sm:$0xff]  ;;  %v554_v40 = vld [vmem:[#allocation11 + $0x1d8] sm:$0xff] }
  0xc7   :  { %668 = vmatpush.msrb.mxu0 %v536_v42  ;;  %688 = vmatpush.msrb.mxu1 %v600_v43  ;;  %v618_v41 = vld [vmem:[#allocation11 + $0x3d8] sm:$0xff]  ;;  %v549_v42 = vld [vmem:[#allocation11 + $0x1b0] sm:$0xff] }
  0xc8   :  { %629 = vmatpush.msra.mxu2 %v531_v44  ;;  %649 = vmatpush.msra.mxu3 %v595_v45  ;;  %v613_v43 = vld [vmem:[#allocation11 + $0x3b0] sm:$0xff]  ;;  %v550_v44 = vld [vmem:[#allocation11 + $0x1b8] sm:$0xff] }
  0xc9   :  { %669 = vmatpush.msrb.mxu0 %v532_v46  ;;  %689 = vmatpush.msrb.mxu1 %v596_v47  ;;  %v614_v45 = vld [vmem:[#allocation11 + $0x3b8] sm:$0xff]  ;;  %v545_v46 = vld [vmem:[#allocation11 + $0x190] sm:$0xff] }
  0xca   :  { %630 = vmatpush.msra.mxu2 %v527_v48  ;;  %650 = vmatpush.msra.mxu3 %v591_v49  ;;  %v609_v47 = vld [vmem:[#allocation11 + $0x390] sm:$0xff]  ;;  %v546_v48 = vld [vmem:[#allocation11 + $0x198] sm:$0xff] }
  0xcb   :  { %670 = vmatpush.msrb.mxu0 %v528_v50  ;;  %690 = vmatpush.msrb.mxu1 %v592_v51  ;;  %v610_v49 = vld [vmem:[#allocation11 + $0x398] sm:$0xff]  ;;  %v541_v50 = vld [vmem:[#allocation11 + $0x170] sm:$0xff] }
  0xcc   :  { %631 = vmatpush.msra.mxu2 %v523_v53  ;;  %651 = vmatpush.msra.mxu3 %v587_v54  ;;  %v605_v51 = vld [vmem:[#allocation11 + $0x370] sm:$0xff]  ;;  %v606_v53 = vld [vmem:[#allocation11 + $0x378] sm:$0xff] }
  0xcd   :  { %671 = vmatpush.msrb.mxu0 %v524_v56  ;;  %691 = vmatpush.msrb.mxu1 %v588_v57  ;;  %v537_v54 = vld [vmem:[#allocation11 + $0x150] sm:$0xff]  ;;  %v538_v56 = vld [vmem:[#allocation11 + $0x158] sm:$0xff] }
  0xce   :  { %632 = vmatpush.msra.mxu2 %v519_v58  ;;  %652 = vmatpush.msra.mxu3 %v583_v59  ;;  %v602_v57 = vld [vmem:[#allocation11 + $0x358] sm:$0xff]  ;;  %v533_v58 = vld [vmem:[#allocation11 + $0x130] sm:$0xff] }
  0xcf   :  { %672 = vmatpush.msrb.mxu0 %v520_v61  ;;  %692 = vmatpush.msrb.mxu1 %v584_v62  ;;  %v597_v59 = vld [vmem:[#allocation11 + $0x330] sm:$0xff]  ;;  %v598_v61 = vld [vmem:[#allocation11 + $0x338] sm:$0xff] }
  0xd0   :  { %633 = vmatpush.msra.mxu2 %v515_v63  ;;  %653 = vmatpush.msra.mxu3 %v579_v0  ;;  %v529_v62 = vld [vmem:[#allocation11 + $0x110] sm:$0xff]  ;;  %v530_v0 = vld [vmem:[#allocation11 + $0x118] sm:$0xff] }
  0xd1   :  { %673 = vmatpush.msrb.mxu0 %v516_v2  ;;  %693 = vmatpush.msrb.mxu1 %v580_v3  ;;  %v593_v63 = vld [vmem:[#allocation11 + $0x310] sm:$0xff] }
  0xd2   :  { %634 = vmatpush.msra.mxu2 %v511_v4  ;;  %654 = vmatpush.msra.mxu3 %v575_v5  ;;  %v525_v2 = vld [vmem:[#allocation11 + $0xf0] sm:$0xff]  ;;  %v526_v4 = vld [vmem:[#allocation11 + $0xf8] sm:$0xff] }
  0xd3   :  { %v589_v3 = vld [vmem:[#allocation11 + $0x2f0] sm:$0xff]  ;;  %v590_v5 = vld [vmem:[#allocation11 + $0x2f8] sm:$0xff] }
 0x139   :  { %v351_v7 = vpop.f32.mrf.mxu0  ;;  %v371_v8 = vpop.f32.mrf.mxu1 }
 0x13a   :  { %v372_v11 = vadd.f32 %v371_v8, %v351_v7  ;;  %v512_v7 = vld [vmem:[#allocation11 + $0x88] sm:$0xff] }
 0x13b   :  { %v576_v8 = vld [vmem:[#allocation11 + $0x288] sm:$0xff]  ;;  %674 = vmatpush.msrb.mxu0 %v512_v7  ;;  %v585_v7 = vld [vmem:[#allocation11 + $0x2d0] sm:$0xff] }
 0x13c   :  { %v375_v20 = vmul.f32 0.03125, %v372_v11  ;;  %v378_v11 = vld [vmem:[#allocation7] sm:$0x1]  ;;  %694 = vmatpush.msrb.mxu1 %v576_v8 }
 0x13d   :  { %v311_v9 = vpop.f32.mrf.mxu2  ;;  %v331_v10 = vpop.f32.mrf.mxu3  ;;  %675 = vmatpush.msrb.mxu0 %v508_v14  ;;  %v522_v8 = vld [vmem:[#allocation11 + $0xd8] sm:$0xff] }
 0x13e   :  { %v332_v12 = vadd.f32 %v331_v10, %v311_v9  ;;  %v507_v9 = vld [vmem:[#allocation11 + $0x60] sm:$0xff]  ;;  %695 = vmatpush.msrb.mxu1 %v572_v15  ;;  %v582_v14 = vld [vmem:[#allocation11 + $0x2b8] sm:$0xff]  ;;  %v513_v15 = vld [vmem:[#allocation11 + $0x90] sm:$0xff] }
 0x13f   :  { %v571_v10 = vld [vmem:[#allocation11 + $0x260] sm:$0xff]  ;;  %635 = vmatpush.msra.mxu2 %v507_v9  ;;  %v586_v9 = vld [vmem:[#allocation11 + $0x2d8] sm:$0xff] }
 0x140   :  { %v2726_v13 = vmul.f32 0.03125, %v332_v12  ;;  %655 = vmatpush.msra.mxu3 %v571_v10  ;;  %v517_v10 = vld [vmem:[#allocation11 + $0xb0] sm:$0xff] }
 0x141   :  { %636 = vmatpush.msra.mxu2 %v503_v16  ;;  %v577_v16 = vld [vmem:[#allocation11 + $0x290] sm:$0xff] }
 0x142   :  { %v376_v21 = vmul.f32 %v2726_v13, %v2726_v13  ;;  %656 = vmatpush.msra.mxu3 %v567_v17  ;;  %v514_v17 = vld [vmem:[#allocation11 + $0x98] sm:$0xff] }
 0x143   :  { %637 = vmatpush.msra.mxu2 %v499_v23  ;;  %v505_v23 = vld [vmem:[#allocation11 + $0x50] sm:$0xff] }
 0x144   :  { %v377_v28 = vsub.f32 %v375_v20, %v376_v21  ;;  %v504_v20 = vld [vmem:[#allocation11 + $0x48] sm:$0xff]  ;;  %657 = vmatpush.msra.mxu3 %v563_v24  ;;  %v569_v24 = vld [vmem:[#allocation11 + $0x250] sm:$0xff] }
 0x145   :  { %v568_v21 = vld [vmem:[#allocation11 + $0x248] sm:$0xff]  ;;  %676 = vmatpush.msrb.mxu0 %v504_v20  ;;  %638 = vmatpush.msra.mxu2 %v495_v29  ;;  %v573_v20 = vld [vmem:[#allocation11 + $0x270] sm:$0xff]  ;;  %v502_v29 = vld [vmem:[#allocation11 + $0x38] sm:$0xff] }
 0x146   :  { %v2730_v33 = vadd.f32 1e-05, %v377_v28  ;;  %696 = vmatpush.msrb.mxu1 %v568_v21  ;;  %658 = vmatpush.msra.mxu3 %v559_v30  ;;  %v510_v21 = vld [vmem:[#allocation11 + $0x78] sm:$0xff] }
 0x147   :  { %677 = vmatpush.msrb.mxu0 %v500_v26  ;;  %v570_v26 = vld [vmem:[#allocation11 + $0x258] sm:$0xff] }
 0x148   :  { %2220 = vrsqrt.f32 %v2730_v33  ;;  %vm386_vm3 = vweird.f32 %v2730_v33  ;;  %697 = vmatpush.msrb.mxu1 %v564_v27  ;;  %v501_v27 = vld [vmem:[#allocation11 + $0x30] sm:$0xff]  ;;  %v566_v30 = vld [vmem:[#allocation11 + $0x238] sm:$0xff] }
 0x149   :  { %678 = vmatpush.msrb.mxu0 %v496_v31  ;;  %v497_v31 = vld [vmem:[#allocation11 + $0x10] sm:$0xff] }
 0x14a   :  { %698 = vmatpush.msrb.mxu1 %v560_v32  ;;  %v561_v32 = vld [vmem:[#allocation11 + $0x210] sm:$0xff] }
 0x14e   :  { %v2221_v52 = vpop.eup %2220 }
 0x14f   :  { %v381_v55 = vmul.f32 %v2221_v52, %v2730_v33  ;;  %vm387_vm2 = vweird.f32 %v2221_v52  ;;  %v621_v33 = vld [vmem:[#allocation11 + $0x3f0] sm:$0xff] }
 0x150   :  { %vm388_vm4 = vmor %vm386_vm3, %vm387_vm2 }
 0x151   :  { %v382_v60 = vmul.f32 %v2221_v52, %v381_v55  ;;  %v601_v55 = vld [vmem:[#allocation11 + $0x350] sm:$0xff] }
 0x153   :  { %v383_v1 = vmul.f32 0.5, %v382_v60  ;;  %v534_v60 = vld [vmem:[#allocation11 + $0x138] sm:$0xff] }
 0x155   :  { %v384_v6 = vsub.f32 1.5, %v383_v1  ;;  %v594_v1 = vld [vmem:[#allocation11 + $0x318] sm:$0xff] }
 0x157   :  { %v385_v12 = vmul.f32 %v2221_v52, %v384_v6  ;;  %v521_v6 = vld [vmem:[#allocation11 + $0xd0] sm:$0xff] }
 0x159   :  { %v389_v18 = vsel %vm388_vm4, %v2221_v52, %v385_v12  ;;  %v542_v52 = vld [vmem:[#allocation11 + $0x178] sm:$0xff] }
 0x15a   :  { %v390_v19 = vmul.f32 %v389_v18, %v378_v11  ;;  %v581_v11 = vld [vmem:[#allocation11 + $0x2b0] sm:$0xff]  ;;  %v518_v12 = vld [vmem:[#allocation11 + $0xb8] sm:$0xff] }
 0x15b   :  { %v578_v18 = vld [vmem:[#allocation11 + $0x298] sm:$0xff] }
 0x15c   :  { %v392_v25 = vmul.f32 %v390_v19, %v2726_v13  ;;  %2191 = vmatmul.msk.f32.vlgmr.msrb.gmra.mxu2 %vm398_vm5, %v390_v19  ;;  %2192 = vmatmul.msk.f32.vlgmr.msrb.gmra.mxu3 %vm398_vm5, %v390_v19  ;;  %v557_v13 = vld [vmem:[#allocation11 + $0x1f0] sm:$0xff] }
 0x15d   :  { %703 = vmatpush.msrb.mxu2 %v557_v13  ;;  %723 = vmatpush.msrb.mxu3 %v621_v33  ;;  %v509_v19 = vld [vmem:[#allocation11 + $0x70] sm:$0xff]  ;;  %v498_v13 = vld [vmem:[#allocation11 + $0x18] sm:$0xff] }
 0x15e   :  { %v393_v28 = vsub.f32 %v391_v22, %v392_v25  ;;  %v574_v22 = vld [vmem:[#allocation11 + $0x278] sm:$0xff] }
 0x15f   :  { %704 = vmatpush.msrb.mxu2 %v553_v38  ;;  %724 = vmatpush.msrb.mxu3 %v617_v39  ;;  %v506_v25 = vld [vmem:[#allocation11 + $0x58] sm:$0xff] }
 0x160   :  { %2193 = vmatmul.msk.f32.vlgmr.msra.gmra.mxu0 %vm398_vm5, %v393_v28  ;;  %2194 = vmatmul.msk.f32.vlgmr.msra.gmra.mxu1 %vm398_vm5, %v393_v28  ;;  %v565_v28 = vld [vmem:[#allocation11 + $0x230] sm:$0xff]  ;;  %v562_v33 = vld [vmem:[#allocation11 + $0x218] sm:$0xff] }
 0x161   :  { %743 = vmatpush.msra.mxu0 %v558_v34  ;;  %763 = vmatpush.msra.mxu1 %v622_v37 }
 0x162   :  { %705 = vmatpush.msrb.mxu2 %v549_v42  ;;  %725 = vmatpush.msrb.mxu3 %v613_v43 }
 0x163   :  { %744 = vmatpush.msra.mxu0 %v554_v40  ;;  %764 = vmatpush.msra.mxu1 %v618_v41 }
 0x164   :  { %706 = vmatpush.msrb.mxu2 %v545_v46  ;;  %726 = vmatpush.msrb.mxu3 %v609_v47 }
 0x165   :  { %745 = vmatpush.msra.mxu0 %v550_v44  ;;  %765 = vmatpush.msra.mxu1 %v614_v45 }
 0x166   :  { %707 = vmatpush.msrb.mxu2 %v541_v50  ;;  %727 = vmatpush.msrb.mxu3 %v605_v51  ;;  %v2746_v50 = vld [vmem:[%s3213_s9 + $0xf8] sm:$0xff] }
 0x167   :  { %746 = vmatpush.msra.mxu0 %v546_v48  ;;  %766 = vmatpush.msra.mxu1 %v610_v49  ;;  %v2751_v51 = vld [vmem:[%s3213_s9 + $0x78] sm:$0xff] }
 0x168   :  { %708 = vmatpush.msrb.mxu2 %v537_v54  ;;  %728 = vmatpush.msrb.mxu3 %v601_v55  ;;  %v2778_v54 = vld [vmem:[%s3213_s9 + $0x1f0] sm:$0xff] }
 0x169   :  { %747 = vmatpush.msra.mxu0 %v542_v52  ;;  %767 = vmatpush.msra.mxu1 %v606_v53  ;;  %v2766_v52 = vld [vmem:[%s3213_s9 + $0xf0] sm:$0xff] }
 0x16a   :  { %709 = vmatpush.msrb.mxu2 %v533_v58  ;;  %729 = vmatpush.msrb.mxu3 %v597_v59  ;;  %v2771_v53 = vld [vmem:[%s3213_s9 + $0x70] sm:$0xff]  ;;  %v2802_v58 = vld [vmem:[%s3213_s9 + $0x1e8] sm:$0xff] }
 0x16b   :  { %748 = vmatpush.msra.mxu0 %v538_v56  ;;  %768 = vmatpush.msra.mxu1 %v602_v57  ;;  %v2783_v55 = vld [vmem:[%s3213_s9 + $0x170] sm:$0xff]  ;;  %v2788_v56 = vld [vmem:[%s3213_s9 + $0xe8] sm:$0xff] }
 0x16c   :  { %710 = vmatpush.msrb.mxu2 %v529_v62  ;;  %730 = vmatpush.msrb.mxu3 %v593_v63  ;;  %v2794_v57 = vld [vmem:[%s3213_s9 + $0x68] sm:$0xff]  ;;  %v2828_v62 = vld [vmem:[%s3213_s9 + $0x1e0] sm:$0xff] }
 0x16d   :  { %749 = vmatpush.msra.mxu0 %v534_v60  ;;  %769 = vmatpush.msra.mxu1 %v598_v61  ;;  %v2807_v59 = vld [vmem:[%s3213_s9 + $0x168] sm:$0xff]  ;;  %v2816_v60 = vld [vmem:[%s3213_s9 + $0xe0] sm:$0xff] }
 0x16e   :  { %711 = vmatpush.msrb.mxu2 %v525_v2  ;;  %731 = vmatpush.msrb.mxu3 %v589_v3  ;;  %v2821_v61 = vld [vmem:[%s3213_s9 + $0x60] sm:$0xff]  ;;  %v2850_v2 = vld [vmem:[%s3213_s9 + $0x1d8] sm:$0xff] }
 0x16f   :  { %750 = vmatpush.msra.mxu0 %v530_v0  ;;  %770 = vmatpush.msra.mxu1 %v594_v1  ;;  %v2833_v63 = vld [vmem:[%s3213_s9 + $0x160] sm:$0xff]  ;;  %v2838_v0 = vld [vmem:[%s3213_s9 + $0xd8] sm:$0xff] }
 0x170   :  { %712 = vmatpush.msrb.mxu2 %v521_v6  ;;  %732 = vmatpush.msrb.mxu3 %v585_v7  ;;  %v2843_v1 = vld [vmem:[%s3213_s9 + $0x58] sm:$0xff]  ;;  %v2874_v6 = vld [vmem:[%s3213_s9 + $0x1d0] sm:$0xff] }
 0x171   :  { %751 = vmatpush.msra.mxu0 %v526_v4  ;;  %771 = vmatpush.msra.mxu1 %v590_v5  ;;  %v2855_v3 = vld [vmem:[%s3213_s9 + $0x158] sm:$0xff]  ;;  %v2860_v4 = vld [vmem:[%s3213_s9 + $0xd0] sm:$0xff] }
 0x172   :  { %713 = vmatpush.msrb.mxu2 %v517_v10  ;;  %733 = vmatpush.msrb.mxu3 %v581_v11  ;;  %v2866_v5 = vld [vmem:[%s3213_s9 + $0x50] sm:$0xff]  ;;  %v2898_v10 = vld [vmem:[%s3213_s9 + $0x1c8] sm:$0xff] }
 0x173   :  { %752 = vmatpush.msra.mxu0 %v522_v8  ;;  %772 = vmatpush.msra.mxu1 %v586_v9  ;;  %v2879_v7 = vld [vmem:[%s3213_s9 + $0x150] sm:$0xff]  ;;  %v2884_v8 = vld [vmem:[%s3213_s9 + $0xc8] sm:$0xff] }
 0x174   :  { %714 = vmatpush.msrb.mxu2 %v513_v15  ;;  %734 = vmatpush.msrb.mxu3 %v577_v16  ;;  %v2890_v9 = vld [vmem:[%s3213_s9 + $0x48] sm:$0xff]  ;;  %v2922_v15 = vld [vmem:[%s3213_s9 + $0x1c0] sm:$0xff] }
 0x175   :  { %753 = vmatpush.msra.mxu0 %v518_v12  ;;  %773 = vmatpush.msra.mxu1 %v582_v14  ;;  %v2903_v11 = vld [vmem:[%s3213_s9 + $0x148] sm:$0xff]  ;;  %v2908_v12 = vld [vmem:[%s3213_s9 + $0xc0] sm:$0xff] }
 0x176   :  { %715 = vmatpush.msrb.mxu2 %v509_v19  ;;  %735 = vmatpush.msrb.mxu3 %v573_v20  ;;  %v2914_v14 = vld [vmem:[%s3213_s9 + $0x40] sm:$0xff]  ;;  %v2946_v19 = vld [vmem:[%s3213_s9 + $0x1b8] sm:$0xff] }
 0x177   :  { %754 = vmatpush.msra.mxu0 %v514_v17  ;;  %774 = vmatpush.msra.mxu1 %v578_v18  ;;  %v2927_v16 = vld [vmem:[%s3213_s9 + $0x140] sm:$0xff]  ;;  %v2932_v17 = vld [vmem:[%s3213_s9 + $0xb8] sm:$0xff] }
 0x178   :  { %716 = vmatpush.msrb.mxu2 %v505_v23  ;;  %736 = vmatpush.msrb.mxu3 %v569_v24  ;;  %v2938_v18 = vld [vmem:[%s3213_s9 + $0x38] sm:$0xff]  ;;  %v2970_v23 = vld [vmem:[%s3213_s9 + $0x1b0] sm:$0xff] }
 0x179   :  { %755 = vmatpush.msra.mxu0 %v510_v21  ;;  %775 = vmatpush.msra.mxu1 %v574_v22  ;;  %v2951_v20 = vld [vmem:[%s3213_s9 + $0x138] sm:$0xff]  ;;  %v2956_v21 = vld [vmem:[%s3213_s9 + $0xb0] sm:$0xff] }
 0x17a   :  { %717 = vmatpush.msrb.mxu2 %v501_v27  ;;  %737 = vmatpush.msrb.mxu3 %v565_v28  ;;  %v2962_v22 = vld [vmem:[%s3213_s9 + $0x30] sm:$0xff]  ;;  %v2992_v27 = vld [vmem:[%s3213_s9 + $0x1a8] sm:$0xff] }
 0x17b   :  { %756 = vmatpush.msra.mxu0 %v506_v25  ;;  %776 = vmatpush.msra.mxu1 %v570_v26  ;;  %v2975_v24 = vld [vmem:[%s3213_s9 + $0x130] sm:$0xff]  ;;  %v2980_v25 = vld [vmem:[%s3213_s9 + $0xa8] sm:$0xff] }
 0x17c   :  { %718 = vmatpush.msrb.mxu2 %v497_v31  ;;  %738 = vmatpush.msrb.mxu3 %v561_v32  ;;  %v788_v26 = vld [vmem:[%s3213_s9 + $0x28] sm:$0xff]  ;;  %v3011_v31 = vld [vmem:[%s3213_s9 + $0x1a0] sm:$0xff] }
 0x17d   :  { %757 = vmatpush.msra.mxu0 %v502_v29  ;;  %777 = vmatpush.msra.mxu1 %v566_v30  ;;  %v2997_v28 = vld [vmem:[%s3213_s9 + $0x128] sm:$0xff]  ;;  %v803_v29 = vld [vmem:[%s3213_s9 + $0xa0] sm:$0xff] }
 0x17e   :  { %v787_v30 = vld [vmem:[%s3213_s9 + $0x20] sm:$0xff] }
 0x17f   :  { %758 = vmatpush.msra.mxu0 %v498_v13  ;;  %778 = vmatpush.msra.mxu1 %v562_v33  ;;  %v3016_v32 = vld [vmem:[%s3213_s9 + $0x120] sm:$0xff]  ;;  %v802_v13 = vld [vmem:[%s3213_s9 + $0x98] sm:$0xff] }
 0x180   :  { %v786_v33 = vld [vmem:[%s3213_s9 + $0x18] sm:$0xff] }
 0x1dd   :  { %v466_v34 = vpop.f32.mrf.mxu0  ;;  %v486_v37 = vpop.f32.mrf.mxu1 }
 0x1de   :  { %v489_v42 = vperm.slane %v466_v34, 0  ;;  %v490_v43 = vperm.slane %v486_v37, 0  ;;  %v3029_v34 = vld [vmem:[%s3213_s9 + $0x198] sm:$0xff]  ;;  %v801_v37 = vld [vmem:[%s3213_s9 + $0x90] sm:$0xff] }
 0x1df   :  { %v419_v38 = vpop.f32.mrf.mxu2  ;;  %v439_v39 = vpop.f32.mrf.mxu3 }
 0x1e0   :  { %v442_v40 = vperm.slane %v419_v38, 0  ;;  %v443_v41 = vperm.slane %v439_v39, 0  ;;  %v785_v38 = vld [vmem:[%s3213_s9 + $0x10] sm:$0xff] }
 0x1e1   :  { %v3042_v39 = vld [vmem:[%s3213_s9 + $0x190] sm:$0xff] }
 0x1e2   :  { %v444_v44 = vmul.f32 %v442_v40, %v2712_v35  ;;  %v445_v45 = vmul.f32 %v443_v41, %v2714_v36  ;;  %v2756_v35 = vld [vmem:[%s3213_s9 + $0x1f8] sm:$0xff]  ;;  %v800_v40 = vld [vmem:[%s3213_s9 + $0x88] sm:$0xff] }
 0x1e3   :  { %v2761_v36 = vld [vmem:[%s3213_s9 + $0x178] sm:$0xff]  ;;  %v784_v41 = vld [vmem:[%s3213_s9 + $0x8] sm:$0xff] }
 0x1e4   :  { %v491_v46 = vadd.f32 %v489_v42, %v444_v44  ;;  %v492_v47 = vadd.f32 %v490_v43, %v445_v45  ;;  %v3054_v42 = vld [vmem:[%s3213_s9 + $0x188] sm:$0xff]  ;;  %v799_v43 = vld [vmem:[%s3213_s9 + $0x80] sm:$0xff]  ;;  %v818_v45 = vld [vmem:[%s3213_s9 + $0x118] sm:$0xff] }
 0x1e5   :  { %v783_v44 = vld [vmem:[%s3213_s9] sm:$0xff] }
 0x1e6   :  { %v493_v48 = vmax.f32 %v491_v46, 0.0  ;;  %v494_v49 = vmax.f32 %v492_v47, 0.0  ;;  %v831_v46 = vld [vmem:[%s3213_s9 + $0x180] sm:$0xff]  ;;  %v817_v47 = vld [vmem:[%s3213_s9 + $0x110] sm:$0xff] }
 0x1e8   :  { %639 = vmatmul.f32.vlgmr.msra.gmra.mxu2 %v493_v48  ;;  %659 = vmatmul.f32.vlgmr.msra.gmra.mxu3 %v494_v49 }
 0x1e9   :  { %679 = vmatmul.f32.vlgmr.msrb.gmra.mxu0 %v493_v48  ;;  %699 = vmatmul.f32.vlgmr.msrb.gmra.mxu1 %v494_v49 }
 0x1ea   :  { %927 = vmatpush.msra.mxu3 %v2746_v50  ;;  %907 = vmatpush.msra.mxu2 %v2751_v51 }
 0x1eb   :  { %967 = vmatpush.msrb.mxu1 %v2756_v35  ;;  %947 = vmatpush.msrb.mxu0 %v2761_v36 }
 0x1ec   :  { %928 = vmatpush.msra.mxu3 %v2766_v52  ;;  %908 = vmatpush.msra.mxu2 %v2771_v53 }
 0x1ed   :  { %968 = vmatpush.msrb.mxu1 %v2778_v54  ;;  %948 = vmatpush.msrb.mxu0 %v2783_v55 }
 0x1ee   :  { %929 = vmatpush.msra.mxu3 %v2788_v56  ;;  %909 = vmatpush.msra.mxu2 %v2794_v57 }
 0x1ef   :  { %969 = vmatpush.msrb.mxu1 %v2802_v58  ;;  %949 = vmatpush.msrb.mxu0 %v2807_v59 }
 0x1f0   :  { %719 = vmatmul.f32.vlgmr.msrb.gmra.mxu2 %v493_v48  ;;  %739 = vmatmul.f32.vlgmr.msrb.gmra.mxu3 %v494_v49 }
 0x1f1   :  { %759 = vmatmul.f32.vlgmr.msra.gmra.mxu0 %v493_v48  ;;  %779 = vmatmul.f32.vlgmr.msra.gmra.mxu1 %v494_v49  ;;  %v816_v48 = vld [vmem:[%s3213_s9 + $0x108] sm:$0xff]  ;;  %v815_v49 = vld [vmem:[%s3213_s9 + $0x100] sm:$0xff]  ;;  %s2518_s9 = smov [#allocation19]  }
 0x1f2   :  { %930 = vmatpush.msra.mxu3 %v2816_v60  ;;  %910 = vmatpush.msra.mxu2 %v2821_v61  ;;  %s2172_s23 = sshll.u32 %s2518_s9, 4  ;;  %s2173_s23 = int_to_ptr.vmem [resolvable:$true] %s2172_s23 }
 0x1f3   :  { %970 = vmatpush.msrb.mxu1 %v2828_v62  ;;  %950 = vmatpush.msrb.mxu0 %v2833_v63 }
 0x1f4   :  { %931 = vmatpush.msra.mxu3 %v2838_v0  ;;  %911 = vmatpush.msra.mxu2 %v2843_v1 }
 0x1f5   :  { %971 = vmatpush.msrb.mxu1 %v2850_v2  ;;  %951 = vmatpush.msrb.mxu0 %v2855_v3 }
 0x1f6   :  { %932 = vmatpush.msra.mxu3 %v2860_v4  ;;  %912 = vmatpush.msra.mxu2 %v2866_v5 }
 0x1f7   :  { %972 = vmatpush.msrb.mxu1 %v2874_v6  ;;  %952 = vmatpush.msrb.mxu0 %v2879_v7 }
 0x1f8   :  { %933 = vmatpush.msra.mxu3 %v2884_v8  ;;  %913 = vmatpush.msra.mxu2 %v2890_v9 }
 0x1f9   :  { %973 = vmatpush.msrb.mxu1 %v2898_v10  ;;  %953 = vmatpush.msrb.mxu0 %v2903_v11 }
 0x1fa   :  { %934 = vmatpush.msra.mxu3 %v2908_v12  ;;  %914 = vmatpush.msra.mxu2 %v2914_v14 }
 0x1fb   :  { %974 = vmatpush.msrb.mxu1 %v2922_v15  ;;  %954 = vmatpush.msrb.mxu0 %v2927_v16 }
 0x1fc   :  { %935 = vmatpush.msra.mxu3 %v2932_v17  ;;  %915 = vmatpush.msra.mxu2 %v2938_v18 }
 0x1fd   :  { %975 = vmatpush.msrb.mxu1 %v2946_v19  ;;  %955 = vmatpush.msrb.mxu0 %v2951_v20 }
 0x1fe   :  { %936 = vmatpush.msra.mxu3 %v2956_v21  ;;  %916 = vmatpush.msra.mxu2 %v2962_v22 }
 0x1ff   :  { %976 = vmatpush.msrb.mxu1 %v2970_v23  ;;  %956 = vmatpush.msrb.mxu0 %v2975_v24 }
 0x200   :  { %937 = vmatpush.msra.mxu3 %v2980_v25  ;;  %917 = vmatpush.msra.mxu2 %v788_v26 }
 0x201   :  { %977 = vmatpush.msrb.mxu1 %v2992_v27  ;;  %957 = vmatpush.msrb.mxu0 %v2997_v28 }
 0x202   :  { %938 = vmatpush.msra.mxu3 %v803_v29  ;;  %918 = vmatpush.msra.mxu2 %v787_v30 }
 0x203   :  { %978 = vmatpush.msrb.mxu1 %v3011_v31  ;;  %958 = vmatpush.msrb.mxu0 %v3016_v32 }
 0x204   :  { %939 = vmatpush.msra.mxu3 %v802_v13  ;;  %919 = vmatpush.msra.mxu2 %v786_v33 }
 0x205   :  { %979 = vmatpush.msrb.mxu1 %v3029_v34  ;;  %959 = vmatpush.msrb.mxu0 %v818_v45 }
 0x206   :  { %940 = vmatpush.msra.mxu3 %v801_v37  ;;  %920 = vmatpush.msra.mxu2 %v785_v38 }
 0x207   :  { %980 = vmatpush.msrb.mxu1 %v3042_v39  ;;  %960 = vmatpush.msrb.mxu0 %v817_v47 }
 0x208   :  { %941 = vmatpush.msra.mxu3 %v800_v40  ;;  %921 = vmatpush.msra.mxu2 %v784_v41 }
 0x209   :  { %981 = vmatpush.msrb.mxu1 %v3054_v42  ;;  %961 = vmatpush.msrb.mxu0 %v816_v48 }
 0x20a   :  { %942 = vmatpush.msra.mxu3 %v799_v43  ;;  %922 = vmatpush.msra.mxu2 %v783_v44 }
 0x20b   :  { %982 = vmatpush.msrb.mxu1 %v831_v46  ;;  %962 = vmatpush.msrb.mxu0 %v815_v49 }
 0x20c   :  { %1007 = vmatpush.msrb.mxu3 %v2746_v50  ;;  %987 = vmatpush.msrb.mxu2 %v2751_v51 }
 0x20d   :  { %1047 = vmatpush.msra.mxu1 %v2756_v35  ;;  %1027 = vmatpush.msra.mxu0 %v2761_v36 }
 0x20e   :  { %1008 = vmatpush.msrb.mxu3 %v2766_v52  ;;  %988 = vmatpush.msrb.mxu2 %v2771_v53 }
 0x20f   :  { %1048 = vmatpush.msra.mxu1 %v2778_v54  ;;  %1028 = vmatpush.msra.mxu0 %v2783_v55 }
 0x210   :  { %1009 = vmatpush.msrb.mxu3 %v2788_v56  ;;  %989 = vmatpush.msrb.mxu2 %v2794_v57 }
 0x211   :  { %1049 = vmatpush.msra.mxu1 %v2802_v58  ;;  %1029 = vmatpush.msra.mxu0 %v2807_v59 }
 0x212   :  { %1010 = vmatpush.msrb.mxu3 %v2816_v60  ;;  %990 = vmatpush.msrb.mxu2 %v2821_v61 }
 0x213   :  { %1050 = vmatpush.msra.mxu1 %v2828_v62  ;;  %1030 = vmatpush.msra.mxu0 %v2833_v63 }
 0x214   :  { %1011 = vmatpush.msrb.mxu3 %v2838_v0  ;;  %991 = vmatpush.msrb.mxu2 %v2843_v1 }
 0x215   :  { %1051 = vmatpush.msra.mxu1 %v2850_v2  ;;  %1031 = vmatpush.msra.mxu0 %v2855_v3 }
 0x216   :  { %1012 = vmatpush.msrb.mxu3 %v2860_v4  ;;  %992 = vmatpush.msrb.mxu2 %v2866_v5 }
 0x217   :  { %1052 = vmatpush.msra.mxu1 %v2874_v6  ;;  %1032 = vmatpush.msra.mxu0 %v2879_v7 }
 0x218   :  { %1013 = vmatpush.msrb.mxu3 %v2884_v8  ;;  %993 = vmatpush.msrb.mxu2 %v2890_v9 }
 0x219   :  { %1053 = vmatpush.msra.mxu1 %v2898_v10  ;;  %1033 = vmatpush.msra.mxu0 %v2903_v11 }
 0x21a   :  { %1014 = vmatpush.msrb.mxu3 %v2908_v12  ;;  %994 = vmatpush.msrb.mxu2 %v2914_v14 }
 0x21b   :  { %1054 = vmatpush.msra.mxu1 %v2922_v15  ;;  %1034 = vmatpush.msra.mxu0 %v2927_v16 }
 0x21c   :  { %1015 = vmatpush.msrb.mxu3 %v2932_v17  ;;  %995 = vmatpush.msrb.mxu2 %v2938_v18 }
 0x21d   :  { %1055 = vmatpush.msra.mxu1 %v2946_v19  ;;  %1035 = vmatpush.msra.mxu0 %v2951_v20 }
 0x21e   :  { %1016 = vmatpush.msrb.mxu3 %v2956_v21  ;;  %996 = vmatpush.msrb.mxu2 %v2962_v22 }
 0x21f   :  { %1056 = vmatpush.msra.mxu1 %v2970_v23  ;;  %1036 = vmatpush.msra.mxu0 %v2975_v24 }
 0x220   :  { %1017 = vmatpush.msrb.mxu3 %v2980_v25  ;;  %997 = vmatpush.msrb.mxu2 %v788_v26 }
 0x221   :  { %1057 = vmatpush.msra.mxu1 %v2992_v27  ;;  %1037 = vmatpush.msra.mxu0 %v2997_v28 }
 0x222   :  { %1018 = vmatpush.msrb.mxu3 %v803_v29  ;;  %998 = vmatpush.msrb.mxu2 %v787_v30 }
 0x223   :  { %1058 = vmatpush.msra.mxu1 %v3011_v31  ;;  %1038 = vmatpush.msra.mxu0 %v3016_v32 }
 0x224   :  { %1019 = vmatpush.msrb.mxu3 %v802_v13  ;;  %999 = vmatpush.msrb.mxu2 %v786_v33 }
 0x225   :  { %1059 = vmatpush.msra.mxu1 %v3029_v34  ;;  %1039 = vmatpush.msra.mxu0 %v818_v45 }
 0x226   :  { %1020 = vmatpush.msrb.mxu3 %v801_v37  ;;  %1000 = vmatpush.msrb.mxu2 %v785_v38 }
 0x227   :  { %1060 = vmatpush.msra.mxu1 %v3042_v39  ;;  %1040 = vmatpush.msra.mxu0 %v817_v47 }
 0x228   :  { %1021 = vmatpush.msrb.mxu3 %v800_v40  ;;  %1001 = vmatpush.msrb.mxu2 %v784_v41 }
 0x229   :  { %1061 = vmatpush.msra.mxu1 %v3054_v42  ;;  %1041 = vmatpush.msra.mxu0 %v816_v48 }
 0x22a   :  { %1022 = vmatpush.msrb.mxu3 %v799_v43  ;;  %1002 = vmatpush.msrb.mxu2 %v783_v44 }
 0x22b   :  { %1062 = vmatpush.msra.mxu1 %v831_v46  ;;  %1042 = vmatpush.msra.mxu0 %v815_v49 }
 0x266   :  { %v680_v50 = vpop.f32.mrf.mxu0  ;;  %v700_v51 = vpop.f32.mrf.mxu1 }
 0x267   :  { %v3127_v35 = vadd.f32 %v700_v51, %v680_v50 }
 0x269   :  { %v854_v36 = vsel %vm263_vm1, %v3127_v35, 0.0  ;;  %v876_v52 = vmul.f32 %v3127_v35, %v3127_v35 }
 0x26a   :  { %v855_v53 = vrot.slane %v854_v36, 4 }
 0x26b   :  { %v886_v54 = vsel %vm263_vm1, %v876_v52, 0.0  ;;  %v640_v55 = vpop.f32.mrf.mxu2  ;;  %v660_v56 = vpop.f32.mrf.mxu3 }
 0x26c   :  { %v856_v57 = vadd.f32 %v855_v53, %v854_v36  ;;  %v887_v58 = vrot.slane %v886_v54, 4  ;;  %v3134_v59 = vadd.f32 %v660_v56, %v640_v55 }
 0x26e   :  { %v857_v60 = vrot.slane %v856_v57, 2  ;;  %v888_v61 = vadd.f32 %v887_v58, %v886_v54  ;;  %v847_v62 = vsel %vm263_vm1, %v3134_v59, 0.0  ;;  %v875_v63 = vmul.f32 %v3134_v59, %v3134_v59  ;;  %v760_v0 = vpop.f32.mrf.mxu0  ;;  %v780_v1 = vpop.f32.mrf.mxu1 }
 0x26f   :  { %v848_v2 = vrot.slane %v847_v62, 4  ;;  %v3140_v3 = vadd.f32 %v780_v1, %v760_v0  ;;  %v1087_v0 = vld [vmem:[#allocation16] sm:$0xff]  ;;  %v1088_v1 = vld [vmem:[#allocation16 + $0x8] sm:$0xff] }
 0x270   :  { %v858_v4 = vadd.f32 %v857_v60, %v856_v57  ;;  %v889_v5 = vrot.slane %v888_v61, 2  ;;  %v879_v6 = vsel %vm263_vm1, %v875_v63, 0.0 }
 0x271   :  { %v849_v7 = vadd.f32 %v848_v2, %v847_v62  ;;  %v880_v8 = vrot.slane %v879_v6, 4  ;;  %v868_v9 = vsel %vm263_vm1, %v3140_v3, 0.0  ;;  %v878_v10 = vmul.f32 %v3140_v3, %v3140_v3  ;;  %v1089_v2 = vld [vmem:[#allocation16 + $0x10] sm:$0xff] }
 0x272   :  { %v869_v11 = vrot.slane %v868_v9, 4  ;;  %v859_v12 = vrot.slane %v858_v4, 1  ;;  %v890_v19 = vadd.f32 %v889_v5, %v888_v61 }
 0x273   :  { %v850_v14 = vrot.slane %v849_v7, 2  ;;  %v881_v15 = vadd.f32 %v880_v8, %v879_v6  ;;  %v900_v16 = vsel %vm263_vm1, %v878_v10, 0.0  ;;  %v720_v17 = vpop.f32.mrf.mxu2  ;;  %v740_v18 = vpop.f32.mrf.mxu3 }
 0x274   :  { %v870_v20 = vadd.f32 %v869_v11, %v868_v9  ;;  %v901_v21 = vrot.slane %v900_v16, 4  ;;  %v3148_v22 = vadd.f32 %v740_v18, %v720_v17  ;;  %v860_v23 = vadd.f32 %v859_v12, %v858_v4  ;;  %v1090_v4 = vld [vmem:[#allocation16 + $0x18] sm:$0xff] }
 0x275   :  { %v851_v24 = vadd.f32 %v850_v14, %v849_v7  ;;  %v882_v25 = vrot.slane %v881_v15, 2  ;;  %v891_v34 = vrot.slane %v890_v19, 1 }
 0x276   :  { %v871_v26 = vrot.slane %v870_v20, 2  ;;  %v902_v27 = vadd.f32 %v901_v21, %v900_v16  ;;  %v861_v28 = vsel %vm263_vm1, %v3148_v22, 0.0  ;;  %v877_v29 = vmul.f32 %v3148_v22, %v3148_v22  ;;  %943 = vmatmul.f32.vlgmr.msra.gmra.mxu3 %v860_v23 }
 0x277   :  { %v862_v30 = vrot.slane %v861_v28, 4  ;;  %v852_v31 = vrot.slane %v851_v24, 1  ;;  %v883_v40 = vadd.f32 %v882_v25, %v881_v15  ;;  %v892_v45 = vadd.f32 %v891_v34, %v890_v19  ;;  %1129 = vmatpush.msra.mxu3 %v1088_v1 }
 0x278   :  { %v872_v32 = vadd.f32 %v871_v26, %v870_v20  ;;  %v903_v13 = vrot.slane %v902_v27, 2  ;;  %v893_v33 = vsel %vm263_vm1, %v877_v29, 0.0  ;;  %v1071_v26 = vld [vmem:[#allocation13] sm:$0x1]  ;;  %v1559_v29 = vld [vmem:[#allocation17 + $0x8d0] sm:$0xff] }
 0x279   :  { %v863_v37 = vadd.f32 %v862_v30, %v861_v28  ;;  %v894_v38 = vrot.slane %v893_v33, 4  ;;  %v853_v39 = vadd.f32 %v852_v31, %v851_v24  ;;  %v884_v49 = vrot.slane %v883_v40, 1  ;;  %v1655_v30 = vld [vmem:[#allocation17 + $0xbd0] sm:$0xff] }
 0x27a   :  { %v873_v41 = vrot.slane %v872_v32, 1  ;;  %v904_v46 = vadd.f32 %v903_v13, %v902_v27  ;;  %v1367_v31 = vld [vmem:[#allocation17 + $0x2d0] sm:$0xff]  ;;  %v1553_v13 = vld [vmem:[#allocation17 + $0x8a0] sm:$0xff] }
 0x27b   :  { %v864_v42 = vrot.slane %v863_v37, 2  ;;  %v895_v43 = vadd.f32 %v894_v38, %v893_v33  ;;  %923 = vmatmul.f32.vlgmr.msra.gmra.mxu2 %v853_v39  ;;  %v885_v52 = vadd.f32 %v884_v49, %v883_v40  ;;  %v1649_v33 = vld [vmem:[#allocation17 + $0xba0] sm:$0xff]  ;;  %v1084_v39 = vld [vmem:[#allocation14] sm:$0x1]  ;;  %v1547_v40 = vld [vmem:[#allocation17 + $0x870] sm:$0xff] }
 0x27c   :  { %v874_v44 = vadd.f32 %v873_v41, %v872_v32  ;;  %v905_v51 = vrot.slane %v904_v46, 1  ;;  %1109 = vmatpush.msra.mxu2 %v1087_v0  ;;  %v1463_v32 = vld [vmem:[#allocation17 + $0x5d0] sm:$0xff]  ;;  %v1457_v38 = vld [vmem:[#allocation17 + $0x5a0] sm:$0xff] }
 0x27d   :  { %v865_v47 = vadd.f32 %v864_v42, %v863_v37  ;;  %v896_v48 = vrot.slane %v895_v43, 2  ;;  %v1361_v37 = vld [vmem:[#allocation17 + $0x2a0] sm:$0xff]  ;;  %v1643_v41 = vld [vmem:[#allocation17 + $0xb70] sm:$0xff] }
 0x27e   :  { %983 = vmatmul.f32.vlgmr.msrb.gmra.mxu1 %v874_v44  ;;  %1023 = vmatmul.f32.vlgmr.msrb.gmra.mxu3 %v892_v45  ;;  %v906_v54 = vadd.f32 %v905_v51, %v904_v46  ;;  %v1355_v42 = vld [vmem:[#allocation17 + $0x270] sm:$0xff]  ;;  %v1541_v45 = vld [vmem:[#allocation17 + $0x840] sm:$0xff] }
 0x27f   :  { %v866_v50 = vrot.slane %v865_v47, 1  ;;  %v897_v53 = vadd.f32 %v896_v48, %v895_v43  ;;  %1169 = vmatpush.msrb.mxu1 %v1090_v4  ;;  %1220 = vmatpush.msrb.mxu3 %v1088_v1  ;;  %v1451_v43 = vld [vmem:[#allocation17 + $0x570] sm:$0xff]  ;;  %v1637_v46 = vld [vmem:[#allocation17 + $0xb40] sm:$0xff] }
 0x280   :  { %v1445_v48 = vld [vmem:[#allocation17 + $0x540] sm:$0xff]  ;;  %v1535_v49 = vld [vmem:[#allocation17 + $0x810] sm:$0xff] }
 0x281   :  { %v867_v36 = vadd.f32 %v866_v50, %v865_v47  ;;  %v898_v55 = vrot.slane %v897_v53, 1  ;;  %v1349_v47 = vld [vmem:[#allocation17 + $0x240] sm:$0xff]  ;;  %v1631_v50 = vld [vmem:[#allocation17 + $0xb10] sm:$0xff] }
 0x282   :  { %v1343_v51 = vld [vmem:[#allocation17 + $0x210] sm:$0xff] }
 0x283   :  { %963 = vmatmul.f32.vlgmr.msrb.gmra.mxu0 %v867_v36  ;;  %1003 = vmatmul.f32.vlgmr.msrb.gmra.mxu2 %v885_v52  ;;  %v899_v56 = vadd.f32 %v898_v55, %v897_v53  ;;  %v1439_v36 = vld [vmem:[#allocation17 + $0x510] sm:$0xff]  ;;  %v1529_v52 = vld [vmem:[#allocation17 + $0x7e0] sm:$0xff] }
 0x284   :  { %1149 = vmatpush.msrb.mxu0 %v1089_v2  ;;  %1200 = vmatpush.msrb.mxu2 %v1087_v0  ;;  %v1625_v53 = vld [vmem:[#allocation17 + $0xae0] sm:$0xff]  ;;  %v1511_v1 = vld [vmem:[#allocation17 + $0x750] sm:$0xff] }
 0x285   :  { %v1433_v55 = vld [vmem:[#allocation17 + $0x4e0] sm:$0xff] }
 0x286   :  { %1063 = vmatmul.f32.vlgmr.msra.gmra.mxu1 %v906_v54  ;;  %v1337_v54 = vld [vmem:[#allocation17 + $0x1e0] sm:$0xff] }
 0x287   :  { %1260 = vmatpush.msra.mxu1 %v1090_v4  ;;  %v1421_v0 = vld [vmem:[#allocation17 + $0x480] sm:$0xff]  ;;  %v1319_v4 = vld [vmem:[#allocation17 + $0x150] sm:$0xff] }
 0x28b   :  { %1043 = vmatmul.f32.vlgmr.msra.gmra.mxu0 %v899_v56  ;;  %v1523_v56 = vld [vmem:[#allocation17 + $0x7b0] sm:$0xff] }
 0x28c   :  { %1240 = vmatpush.msra.mxu0 %v1089_v2  ;;  %v1607_v2 = vld [vmem:[#allocation17 + $0xa50] sm:$0xff] }
 0x2f9   :  { %v944_v57 = vpop.f32.mrf.mxu3 }
 0x2fb   :  { %v984_v61 = vpop.f32.mrf.mxu1 }
 0x2fe   :  { %v924_v58 = vpop.f32.mrf.mxu2 }
 0x2ff   :  { %v945_v60 = vadd.f32 %v944_v57, %v924_v58  ;;  %v1619_v57 = vld [vmem:[#allocation17 + $0xab0] sm:$0xff] }
 0x300   :  { %v964_v62 = vpop.f32.mrf.mxu0  ;;  %v1331_v58 = vld [vmem:[#allocation17 + $0x1b0] sm:$0xff] }
 0x301   :  { %v965_v63 = vadd.f32 %v964_v62, %v945_v60  ;;  %v1024_v6 = vpop.f32.mrf.mxu3  ;;  %v1427_v60 = vld [vmem:[#allocation17 + $0x4b0] sm:$0xff]  ;;  %v1613_v62 = vld [vmem:[#allocation17 + $0xa80] sm:$0xff] }
 0x303   :  { %v985_v5 = vadd.f32 %v984_v61, %v965_v63  ;;  %v1064_v12 = vpop.f32.mrf.mxu1  ;;  %v1517_v61 = vld [vmem:[#allocation17 + $0x780] sm:$0xff] }
 0x304   :  { %v1325_v63 = vld [vmem:[#allocation17 + $0x180] sm:$0xff] }
 0x305   :  { %v1067_v10 = vmul.f32 0.0078125, %v985_v5  ;;  %v1415_v5 = vld [vmem:[#allocation17 + $0x450] sm:$0xff] }
 0x306   :  { %v1004_v7 = vpop.f32.mrf.mxu2 }
 0x307   :  { %v1025_v8 = vadd.f32 %v1024_v6, %v1004_v7  ;;  %v1069_v15 = vmul.f32 %v1067_v10, %v1067_v10  ;;  %v1505_v6 = vld [vmem:[#allocation17 + $0x720] sm:$0xff] }
 0x308   :  { %v1044_v9 = vpop.f32.mrf.mxu0  ;;  %v1601_v7 = vld [vmem:[#allocation17 + $0xa20] sm:$0xff] }
 0x309   :  { %v1045_v11 = vadd.f32 %v1044_v9, %v1025_v8  ;;  %v1313_v8 = vld [vmem:[#allocation17 + $0x120] sm:$0xff] }
 0x30a   :  { %v1409_v9 = vld [vmem:[#allocation17 + $0x420] sm:$0xff] }
 0x30b   :  { %v1065_v14 = vadd.f32 %v1064_v12, %v1045_v11  ;;  %v1595_v11 = vld [vmem:[#allocation17 + $0x9f0] sm:$0xff] }
 0x30c   :  { %v1307_v12 = vld [vmem:[#allocation17 + $0xf0] sm:$0xff] }
 0x30d   :  { %v1068_v16 = vmul.f32 0.0078125, %v1065_v14  ;;  %v1403_v14 = vld [vmem:[#allocation17 + $0x3f0] sm:$0xff] }
 0x30f   :  { %v1070_v17 = vsub.f32 %v1068_v16, %v1069_v15  ;;  %v1493_v15 = vld [vmem:[#allocation17 + $0x6c0] sm:$0xff] }
 0x310   :  { %v1589_v16 = vld [vmem:[#allocation17 + $0x9c0] sm:$0xff] }
 0x311   :  { %v1072_v18 = vadd.f32 1e-05, %v1070_v17  ;;  %v1301_v17 = vld [vmem:[#allocation17 + $0xc0] sm:$0xff] }
 0x313   :  { %2222 = vrsqrt.f32 %v1072_v18  ;;  %vm1079_vm7 = vweird.f32 %v1072_v18 }
 0x319   :  { %v2223_v19 = vpop.eup %2222 }
 0x31a   :  { %v1074_v20 = vmul.f32 %v2223_v19, %v1072_v18  ;;  %vm1080_vm6 = vweird.f32 %v2223_v19  ;;  %v1397_v18 = vld [vmem:[#allocation17 + $0x3c0] sm:$0xff] }
 0x31b   :  { %vm1081_vm8 = vmor %vm1079_vm7, %vm1080_vm6 }
 0x31c   :  { %v1075_v21 = vmul.f32 %v2223_v19, %v1074_v20  ;;  %v1583_v20 = vld [vmem:[#allocation17 + $0x990] sm:$0xff] }
 0x31e   :  { %v1076_v23 = vmul.f32 0.5, %v1075_v21  ;;  %v1295_v21 = vld [vmem:[#allocation17 + $0x90] sm:$0xff] }
 0x320   :  { %v1077_v24 = vsub.f32 1.5, %v1076_v23  ;;  %v1391_v23 = vld [vmem:[#allocation17 + $0x390] sm:$0xff] }
 0x322   :  { %v1078_v25 = vmul.f32 %v2223_v19, %v1077_v24  ;;  %v1481_v24 = vld [vmem:[#allocation17 + $0x660] sm:$0xff] }
 0x324   :  { %v1082_v27 = vsel %vm1081_vm8, %v2223_v19, %v1078_v25  ;;  %v1487_v19 = vld [vmem:[#allocation17 + $0x690] sm:$0xff]  ;;  %v1577_v25 = vld [vmem:[#allocation17 + $0x960] sm:$0xff] }
 0x325   :  { %v1083_v28 = vmul.f32 %v1082_v27, %v1071_v26  ;;  %v1289_v26 = vld [vmem:[#allocation17 + $0x60] sm:$0xff] }
 0x326   :  { %v1385_v27 = vld [vmem:[#allocation17 + $0x360] sm:$0xff] }
 0x327   :  { %2195 = vmatmul.msk.f32.vlgmr.msra.gmra.mxu2 %vm187_vm0, %v1083_v28  ;;  %2196 = vmatmul.msk.f32.vlgmr.msra.gmra.mxu3 %vm187_vm0, %v1083_v28  ;;  %v1085_v34 = vmul.f32 %v1083_v28, %v1067_v10  ;;  %v1499_v10 = vld [vmem:[#allocation17 + $0x6f0] sm:$0xff] }
 0x328   :  { %2197 = vmatmul.msk.f32.vlgmr.msrb.gmra.mxu0 %vm187_vm0, %v1083_v28  ;;  %2198 = vmatmul.msk.f32.vlgmr.msrb.gmra.mxu1 %vm187_vm0, %v1083_v28  ;;  %v1475_v28 = vld [vmem:[#allocation17 + $0x630] sm:$0xff] }
 0x329   :  { %1701 = vmatpush.msrb.mxu0 %v1559_v29  ;;  %1721 = vmatpush.msrb.mxu1 %v1655_v30  ;;  %v1086_v44 = vsub.f32 %v1084_v39, %v1085_v34  ;;  %v1571_v29 = vld [vmem:[#allocation17 + $0x930] sm:$0xff]  ;;  %v1656_v34 = vld [vmem:[#allocation17 + $0xbd8] sm:$0xff]  ;;  %v1554_v39 = vld [vmem:[#allocation17 + $0x8a8] sm:$0xff] }
 0x32a   :  { %1661 = vmatpush.msra.mxu2 %v1367_v31  ;;  %1681 = vmatpush.msra.mxu3 %v1463_v32  ;;  %v1283_v30 = vld [vmem:[#allocation17 + $0x30] sm:$0xff]  ;;  %v1469_v32 = vld [vmem:[#allocation17 + $0x600] sm:$0xff] }
 0x32b   :  { %1702 = vmatpush.msrb.mxu0 %v1553_v13  ;;  %1722 = vmatpush.msrb.mxu1 %v1649_v33  ;;  %v1379_v31 = vld [vmem:[#allocation17 + $0x330] sm:$0xff]  ;;  %v1565_v13 = vld [vmem:[#allocation17 + $0x900] sm:$0xff]  ;;  %v1560_v33 = vld [vmem:[#allocation17 + $0x8d8] sm:$0xff] }
 0x32c   :  { %1662 = vmatpush.msra.mxu2 %v1361_v37  ;;  %1682 = vmatpush.msra.mxu3 %v1457_v38  ;;  %v1277_v37 = vld [vmem:[#allocation17] sm:$0xff] }
 0x32d   :  { %1703 = vmatpush.msrb.mxu0 %v1547_v40  ;;  %1723 = vmatpush.msrb.mxu1 %v1643_v41  ;;  %v1373_v38 = vld [vmem:[#allocation17 + $0x300] sm:$0xff]  ;;  %v1650_v40 = vld [vmem:[#allocation17 + $0xba8] sm:$0xff]  ;;  %v1368_v41 = vld [vmem:[#allocation17 + $0x2d8] sm:$0xff] }
 0x32e   :  { %1663 = vmatpush.msra.mxu2 %v1355_v42  ;;  %1683 = vmatpush.msra.mxu3 %v1451_v43  ;;  %v1464_v42 = vld [vmem:[#allocation17 + $0x5d8] sm:$0xff] }
 0x32f   :  { %2199 = vmatmul.msk.f32.vlgmr.msrb.gmra.mxu2 %vm187_vm0, %v1086_v44  ;;  %2200 = vmatmul.msk.f32.vlgmr.msrb.gmra.mxu3 %vm187_vm0, %v1086_v44  ;;  %v1548_v43 = vld [vmem:[#allocation17 + $0x878] sm:$0xff] }
 0x330   :  { %2201 = vmatmul.msk.f32.vlgmr.msra.gmra.mxu0 %vm187_vm0, %v1086_v44  ;;  %2202 = vmatmul.msk.f32.vlgmr.msra.gmra.mxu1 %vm187_vm0, %v1086_v44  ;;  %v1644_v44 = vld [vmem:[#allocation17 + $0xb78] sm:$0xff] }
 0x331   :  { %1704 = vmatpush.msrb.mxu0 %v1541_v45  ;;  %1724 = vmatpush.msrb.mxu1 %v1637_v46  ;;  %v1362_v45 = vld [vmem:[#allocation17 + $0x2a8] sm:$0xff] }
 0x332   :  { %1664 = vmatpush.msra.mxu2 %v1349_v47  ;;  %1684 = vmatpush.msra.mxu3 %v1445_v48  ;;  %v1458_v46 = vld [vmem:[#allocation17 + $0x5a8] sm:$0xff] }
 0x333   :  { %1705 = vmatpush.msrb.mxu0 %v1535_v49  ;;  %1725 = vmatpush.msrb.mxu1 %v1631_v50  ;;  %v1542_v47 = vld [vmem:[#allocation17 + $0x848] sm:$0xff]  ;;  %v1356_v49 = vld [vmem:[#allocation17 + $0x278] sm:$0xff] }
 0x334   :  { %1665 = vmatpush.msra.mxu2 %v1343_v51  ;;  %1685 = vmatpush.msra.mxu3 %v1439_v36  ;;  %v1638_v48 = vld [vmem:[#allocation17 + $0xb48] sm:$0xff]  ;;  %v1452_v50 = vld [vmem:[#allocation17 + $0x578] sm:$0xff] }
 0x335   :  { %1706 = vmatpush.msrb.mxu0 %v1529_v52  ;;  %1726 = vmatpush.msrb.mxu1 %v1625_v53  ;;  %v1536_v51 = vld [vmem:[#allocation17 + $0x818] sm:$0xff]  ;;  %v1350_v52 = vld [vmem:[#allocation17 + $0x248] sm:$0xff] }
 0x336   :  { %1666 = vmatpush.msra.mxu2 %v1337_v54  ;;  %1686 = vmatpush.msra.mxu3 %v1433_v55  ;;  %v1632_v36 = vld [vmem:[#allocation17 + $0xb18] sm:$0xff]  ;;  %v1446_v53 = vld [vmem:[#allocation17 + $0x548] sm:$0xff] }
 0x337   :  { %1707 = vmatpush.msrb.mxu0 %v1523_v56  ;;  %1727 = vmatpush.msrb.mxu1 %v1619_v57  ;;  %v1530_v54 = vld [vmem:[#allocation17 + $0x7e8] sm:$0xff]  ;;  %v1344_v56 = vld [vmem:[#allocation17 + $0x218] sm:$0xff] }
 0x338   :  { %1667 = vmatpush.msra.mxu2 %v1331_v58  ;;  %1687 = vmatpush.msra.mxu3 %v1427_v60  ;;  %v1626_v55 = vld [vmem:[#allocation17 + $0xae8] sm:$0xff]  ;;  %v1440_v57 = vld [vmem:[#allocation17 + $0x518] sm:$0xff] }
 0x339   :  { %1708 = vmatpush.msrb.mxu0 %v1517_v61  ;;  %1728 = vmatpush.msrb.mxu1 %v1613_v62  ;;  %v1524_v58 = vld [vmem:[#allocation17 + $0x7b8] sm:$0xff]  ;;  %v1518_v61 = vld [vmem:[#allocation17 + $0x788] sm:$0xff] }
 0x33a   :  { %1668 = vmatpush.msra.mxu2 %v1325_v63  ;;  %1688 = vmatpush.msra.mxu3 %v1421_v0  ;;  %v1620_v60 = vld [vmem:[#allocation17 + $0xab8] sm:$0xff]  ;;  %v1614_v62 = vld [vmem:[#allocation17 + $0xa88] sm:$0xff] }
 0x33b   :  { %1709 = vmatpush.msrb.mxu0 %v1511_v1  ;;  %1729 = vmatpush.msrb.mxu1 %v1607_v2  ;;  %v1338_v63 = vld [vmem:[#allocation17 + $0x1e8] sm:$0xff]  ;;  %v1512_v1 = vld [vmem:[#allocation17 + $0x758] sm:$0xff] }
 0x33c   :  { %1669 = vmatpush.msra.mxu2 %v1319_v4  ;;  %1689 = vmatpush.msra.mxu3 %v1415_v5  ;;  %v1434_v0 = vld [vmem:[#allocation17 + $0x4e8] sm:$0xff]  ;;  %v1608_v2 = vld [vmem:[#allocation17 + $0xa58] sm:$0xff] }
 0x33d   :  { %1710 = vmatpush.msrb.mxu0 %v1505_v6  ;;  %1730 = vmatpush.msrb.mxu1 %v1601_v7  ;;  %v1332_v4 = vld [vmem:[#allocation17 + $0x1b8] sm:$0xff]  ;;  %v1506_v6 = vld [vmem:[#allocation17 + $0x728] sm:$0xff] }
 0x33e   :  { %1670 = vmatpush.msra.mxu2 %v1313_v8  ;;  %1690 = vmatpush.msra.mxu3 %v1409_v9  ;;  %v1428_v5 = vld [vmem:[#allocation17 + $0x4b8] sm:$0xff]  ;;  %v1602_v7 = vld [vmem:[#allocation17 + $0xa28] sm:$0xff] }
 0x33f   :  { %1711 = vmatpush.msrb.mxu0 %v1499_v10  ;;  %1731 = vmatpush.msrb.mxu1 %v1595_v11  ;;  %v1326_v8 = vld [vmem:[#allocation17 + $0x188] sm:$0xff]  ;;  %v1500_v10 = vld [vmem:[#allocation17 + $0x6f8] sm:$0xff] }
 0x340   :  { %1671 = vmatpush.msra.mxu2 %v1307_v12  ;;  %1691 = vmatpush.msra.mxu3 %v1403_v14  ;;  %v1422_v9 = vld [vmem:[#allocation17 + $0x488] sm:$0xff]  ;;  %v1596_v11 = vld [vmem:[#allocation17 + $0x9f8] sm:$0xff] }
 0x341   :  { %1712 = vmatpush.msrb.mxu0 %v1493_v15  ;;  %1732 = vmatpush.msrb.mxu1 %v1589_v16  ;;  %v1320_v12 = vld [vmem:[#allocation17 + $0x158] sm:$0xff]  ;;  %v1494_v15 = vld [vmem:[#allocation17 + $0x6c8] sm:$0xff] }
 0x342   :  { %1672 = vmatpush.msra.mxu2 %v1301_v17  ;;  %1692 = vmatpush.msra.mxu3 %v1397_v18  ;;  %v1416_v14 = vld [vmem:[#allocation17 + $0x458] sm:$0xff]  ;;  %v1590_v16 = vld [vmem:[#allocation17 + $0x9c8] sm:$0xff] }
 0x343   :  { %1713 = vmatpush.msrb.mxu0 %v1487_v19  ;;  %1733 = vmatpush.msrb.mxu1 %v1583_v20  ;;  %v1314_v17 = vld [vmem:[#allocation17 + $0x128] sm:$0xff]  ;;  %v1488_v19 = vld [vmem:[#allocation17 + $0x698] sm:$0xff] }
 0x344   :  { %1673 = vmatpush.msra.mxu2 %v1295_v21  ;;  %1693 = vmatpush.msra.mxu3 %v1391_v23  ;;  %v1410_v18 = vld [vmem:[#allocation17 + $0x428] sm:$0xff]  ;;  %v1584_v20 = vld [vmem:[#allocation17 + $0x998] sm:$0xff] }
 0x345   :  { %1714 = vmatpush.msrb.mxu0 %v1481_v24  ;;  %1734 = vmatpush.msrb.mxu1 %v1577_v25  ;;  %v1308_v21 = vld [vmem:[#allocation17 + $0xf8] sm:$0xff]  ;;  %v1482_v24 = vld [vmem:[#allocation17 + $0x668] sm:$0xff] }
 0x346   :  { %1674 = vmatpush.msra.mxu2 %v1289_v26  ;;  %1694 = vmatpush.msra.mxu3 %v1385_v27  ;;  %v1404_v23 = vld [vmem:[#allocation17 + $0x3f8] sm:$0xff]  ;;  %v1578_v25 = vld [vmem:[#allocation17 + $0x968] sm:$0xff] }
 0x347   :  { %1715 = vmatpush.msrb.mxu0 %v1475_v28  ;;  %1735 = vmatpush.msrb.mxu1 %v1571_v29  ;;  %v1302_v26 = vld [vmem:[#allocation17 + $0xc8] sm:$0xff]  ;;  %v1476_v28 = vld [vmem:[#allocation17 + $0x638] sm:$0xff] }
 0x348   :  { %1675 = vmatpush.msra.mxu2 %v1283_v30  ;;  %1695 = vmatpush.msra.mxu3 %v1379_v31  ;;  %v1398_v27 = vld [vmem:[#allocation17 + $0x3c8] sm:$0xff]  ;;  %v1572_v29 = vld [vmem:[#allocation17 + $0x938] sm:$0xff] }
 0x349   :  { %1716 = vmatpush.msrb.mxu0 %v1469_v32  ;;  %1736 = vmatpush.msrb.mxu1 %v1565_v13  ;;  %v1296_v30 = vld [vmem:[#allocation17 + $0x98] sm:$0xff]  ;;  %v1470_v32 = vld [vmem:[#allocation17 + $0x608] sm:$0xff] }
 0x34a   :  { %1676 = vmatpush.msra.mxu2 %v1277_v37  ;;  %1696 = vmatpush.msra.mxu3 %v1373_v38  ;;  %v1392_v31 = vld [vmem:[#allocation17 + $0x398] sm:$0xff]  ;;  %v1566_v13 = vld [vmem:[#allocation17 + $0x908] sm:$0xff] }
 0x34b   :  { %1781 = vmatpush.msra.mxu0 %v1560_v33  ;;  %1801 = vmatpush.msra.mxu1 %v1656_v34  ;;  %v1290_v33 = vld [vmem:[#allocation17 + $0x68] sm:$0xff]  ;;  %v1284_v37 = vld [vmem:[#allocation17 + $0x38] sm:$0xff] }
 0x34c   :  { %1741 = vmatpush.msrb.mxu2 %v1368_v41  ;;  %1761 = vmatpush.msrb.mxu3 %v1464_v42  ;;  %v1386_v34 = vld [vmem:[#allocation17 + $0x368] sm:$0xff]  ;;  %v1380_v38 = vld [vmem:[#allocation17 + $0x338] sm:$0xff] }
 0x34d   :  { %1782 = vmatpush.msra.mxu0 %v1554_v39  ;;  %1802 = vmatpush.msra.mxu1 %v1650_v40  ;;  %v1278_v39 = vld [vmem:[#allocation17 + $0x8] sm:$0xff] }
 0x34e   :  { %1742 = vmatpush.msrb.mxu2 %v1362_v45  ;;  %1762 = vmatpush.msrb.mxu3 %v1458_v46  ;;  %v1374_v40 = vld [vmem:[#allocation17 + $0x308] sm:$0xff] }
 0x34f   :  { %1783 = vmatpush.msra.mxu0 %v1548_v43  ;;  %1803 = vmatpush.msra.mxu1 %v1644_v44 }
 0x350   :  { %1743 = vmatpush.msrb.mxu2 %v1356_v49  ;;  %1763 = vmatpush.msrb.mxu3 %v1452_v50 }
 0x351   :  { %1784 = vmatpush.msra.mxu0 %v1542_v47  ;;  %1804 = vmatpush.msra.mxu1 %v1638_v48 }
 0x352   :  { %1744 = vmatpush.msrb.mxu2 %v1350_v52  ;;  %1764 = vmatpush.msrb.mxu3 %v1446_v53 }
 0x353   :  { %1785 = vmatpush.msra.mxu0 %v1536_v51  ;;  %1805 = vmatpush.msra.mxu1 %v1632_v36 }
 0x354   :  { %1745 = vmatpush.msrb.mxu2 %v1344_v56  ;;  %1765 = vmatpush.msrb.mxu3 %v1440_v57 }
 0x355   :  { %1786 = vmatpush.msra.mxu0 %v1530_v54  ;;  %1806 = vmatpush.msra.mxu1 %v1626_v55 }
 0x356   :  { %1746 = vmatpush.msrb.mxu2 %v1338_v63  ;;  %1766 = vmatpush.msrb.mxu3 %v1434_v0 }
 0x357   :  { %1787 = vmatpush.msra.mxu0 %v1524_v58  ;;  %1807 = vmatpush.msra.mxu1 %v1620_v60 }
 0x358   :  { %1747 = vmatpush.msrb.mxu2 %v1332_v4  ;;  %1767 = vmatpush.msrb.mxu3 %v1428_v5 }
 0x359   :  { %1788 = vmatpush.msra.mxu0 %v1518_v61  ;;  %1808 = vmatpush.msra.mxu1 %v1614_v62  ;;  %v1561_v61 = vld [vmem:[#allocation17 + $0x8e0] sm:$0xff] }
 0x35a   :  { %1748 = vmatpush.msrb.mxu2 %v1326_v8  ;;  %1768 = vmatpush.msrb.mxu3 %v1422_v9  ;;  %v1657_v62 = vld [vmem:[#allocation17 + $0xbe0] sm:$0xff] }
 0x35b   :  { %1789 = vmatpush.msra.mxu0 %v1512_v1  ;;  %1809 = vmatpush.msra.mxu1 %v1608_v2  ;;  %v1555_v1 = vld [vmem:[#allocation17 + $0x8b0] sm:$0xff] }
 0x35c   :  { %1749 = vmatpush.msrb.mxu2 %v1320_v12  ;;  %1769 = vmatpush.msrb.mxu3 %v1416_v14  ;;  %v1651_v2 = vld [vmem:[#allocation17 + $0xbb0] sm:$0xff] }
 0x35d   :  { %1790 = vmatpush.msra.mxu0 %v1506_v6  ;;  %1810 = vmatpush.msra.mxu1 %v1602_v7  ;;  %v1549_v6 = vld [vmem:[#allocation17 + $0x880] sm:$0xff]  ;;  %v1363_v12 = vld [vmem:[#allocation17 + $0x2b0] sm:$0xff] }
 0x35e   :  { %1750 = vmatpush.msrb.mxu2 %v1314_v17  ;;  %1770 = vmatpush.msrb.mxu3 %v1410_v18  ;;  %v1645_v7 = vld [vmem:[#allocation17 + $0xb80] sm:$0xff]  ;;  %v1459_v14 = vld [vmem:[#allocation17 + $0x5b0] sm:$0xff] }
 0x35f   :  { %1791 = vmatpush.msra.mxu0 %v1500_v10  ;;  %1811 = vmatpush.msra.mxu1 %v1596_v11  ;;  %v1543_v10 = vld [vmem:[#allocation17 + $0x850] sm:$0xff]  ;;  %v1357_v17 = vld [vmem:[#allocation17 + $0x280] sm:$0xff] }
 0x360   :  { %1751 = vmatpush.msrb.mxu2 %v1308_v21  ;;  %1771 = vmatpush.msrb.mxu3 %v1404_v23  ;;  %v1639_v11 = vld [vmem:[#allocation17 + $0xb50] sm:$0xff]  ;;  %v1453_v18 = vld [vmem:[#allocation17 + $0x580] sm:$0xff] }
 0x361   :  { %1792 = vmatpush.msra.mxu0 %v1494_v15  ;;  %1812 = vmatpush.msra.mxu1 %v1590_v16  ;;  %v1537_v15 = vld [vmem:[#allocation17 + $0x820] sm:$0xff]  ;;  %v1351_v21 = vld [vmem:[#allocation17 + $0x250] sm:$0xff] }
 0x362   :  { %1752 = vmatpush.msrb.mxu2 %v1302_v26  ;;  %1772 = vmatpush.msrb.mxu3 %v1398_v27  ;;  %v1633_v16 = vld [vmem:[#allocation17 + $0xb20] sm:$0xff]  ;;  %v1447_v23 = vld [vmem:[#allocation17 + $0x550] sm:$0xff] }
 0x363   :  { %1793 = vmatpush.msra.mxu0 %v1488_v19  ;;  %1813 = vmatpush.msra.mxu1 %v1584_v20  ;;  %v1531_v19 = vld [vmem:[#allocation17 + $0x7f0] sm:$0xff]  ;;  %v1345_v26 = vld [vmem:[#allocation17 + $0x220] sm:$0xff] }
 0x364   :  { %1753 = vmatpush.msrb.mxu2 %v1296_v30  ;;  %1773 = vmatpush.msrb.mxu3 %v1392_v31  ;;  %v1627_v20 = vld [vmem:[#allocation17 + $0xaf0] sm:$0xff]  ;;  %v1441_v27 = vld [vmem:[#allocation17 + $0x520] sm:$0xff] }
 0x365   :  { %1794 = vmatpush.msra.mxu0 %v1482_v24  ;;  %1814 = vmatpush.msra.mxu1 %v1578_v25  ;;  %v1525_v24 = vld [vmem:[#allocation17 + $0x7c0] sm:$0xff]  ;;  %v1339_v30 = vld [vmem:[#allocation17 + $0x1f0] sm:$0xff] }
 0x366   :  { %1754 = vmatpush.msrb.mxu2 %v1290_v33  ;;  %1774 = vmatpush.msrb.mxu3 %v1386_v34  ;;  %v1621_v25 = vld [vmem:[#allocation17 + $0xac0] sm:$0xff]  ;;  %v1435_v31 = vld [vmem:[#allocation17 + $0x4f0] sm:$0xff] }
 0x367   :  { %1795 = vmatpush.msra.mxu0 %v1476_v28  ;;  %1815 = vmatpush.msra.mxu1 %v1572_v29  ;;  %v1519_v28 = vld [vmem:[#allocation17 + $0x790] sm:$0xff]  ;;  %v1333_v33 = vld [vmem:[#allocation17 + $0x1c0] sm:$0xff] }
 0x368   :  { %1755 = vmatpush.msrb.mxu2 %v1284_v37  ;;  %1775 = vmatpush.msrb.mxu3 %v1380_v38  ;;  %v1615_v29 = vld [vmem:[#allocation17 + $0xa90] sm:$0xff]  ;;  %v1429_v34 = vld [vmem:[#allocation17 + $0x4c0] sm:$0xff] }
 0x369   :  { %1796 = vmatpush.msra.mxu0 %v1470_v32  ;;  %1816 = vmatpush.msra.mxu1 %v1566_v13  ;;  %v1513_v32 = vld [vmem:[#allocation17 + $0x760] sm:$0xff]  ;;  %v1507_v37 = vld [vmem:[#allocation17 + $0x730] sm:$0xff] }
 0x36a   :  { %1756 = vmatpush.msrb.mxu2 %v1278_v39  ;;  %1776 = vmatpush.msrb.mxu3 %v1374_v40  ;;  %v1609_v13 = vld [vmem:[#allocation17 + $0xa60] sm:$0xff]  ;;  %v1603_v38 = vld [vmem:[#allocation17 + $0xa30] sm:$0xff] }
 0x36b   :  { %v1327_v39 = vld [vmem:[#allocation17 + $0x190] sm:$0xff] }
 0x36c   :  { %v1423_v40 = vld [vmem:[#allocation17 + $0x490] sm:$0xff] }
 0x3a5   :  { %v1151_v41 = vpop.f32.mrf.mxu0  ;;  %v1171_v42 = vpop.f32.mrf.mxu1 }
 0x3a6   :  { %v1176_v43 = vperm.slane %v1151_v41, 0  ;;  %v1177_v44 = vperm.slane %v1171_v42, 0  ;;  %v1501_v41 = vld [vmem:[#allocation17 + $0x700] sm:$0xff] }
 0x3a7   :  { %v1597_v42 = vld [vmem:[#allocation17 + $0xa00] sm:$0xff] }
 0x3a8   :  { %v1180_v49 = vmul.f32 %v1176_v43, %v3148_v22  ;;  %v1181_v50 = vmul.f32 %v1177_v44, %v3140_v3  ;;  %v1321_v43 = vld [vmem:[#allocation17 + $0x160] sm:$0xff] }
 0x3a9   :  { %v1417_v44 = vld [vmem:[#allocation17 + $0x460] sm:$0xff] }
 0x3aa   :  { %v1111_v45 = vpop.f32.mrf.mxu2  ;;  %v1131_v46 = vpop.f32.mrf.mxu3 }
 0x3ab   :  { %v1174_v52 = vperm.slane %v1111_v45, 0  ;;  %v1175_v53 = vperm.slane %v1131_v46, 0  ;;  %v1495_v45 = vld [vmem:[#allocation17 + $0x6d0] sm:$0xff] }
 0x3ac   :  { %v1591_v46 = vld [vmem:[#allocation17 + $0x9d0] sm:$0xff] }
 0x3ad   :  { %v1242_v47 = vpop.f32.mrf.mxu0  ;;  %v1262_v48 = vpop.f32.mrf.mxu1  ;;  %v1178_v63 = vmul.f32 %v1174_v52, %v3134_v59  ;;  %v1179_v22 = vmul.f32 %v1175_v53, %v3127_v35  ;;  %v1369_v35 = vld [vmem:[#allocation17 + $0x2e0] sm:$0xff]  ;;  %v1483_v52 = vld [vmem:[#allocation17 + $0x670] sm:$0xff] }
 0x3ae   :  { %v1267_v51 = vperm.slane %v1242_v47, 0  ;;  %v1268_v36 = vperm.slane %v1262_v48, 0  ;;  %v1465_v59 = vld [vmem:[#allocation17 + $0x5e0] sm:$0xff]  ;;  %v1315_v47 = vld [vmem:[#allocation17 + $0x130] sm:$0xff] }
 0x3af   :  { %v1411_v48 = vld [vmem:[#allocation17 + $0x430] sm:$0xff] }
 0x3b0   :  { %v1271_v54 = vadd.f32 %v1267_v51, %v1180_v49  ;;  %v1272_v55 = vadd.f32 %v1268_v36, %v1181_v50  ;;  %v1489_v49 = vld [vmem:[#allocation17 + $0x6a0] sm:$0xff]  ;;  %v1579_v53 = vld [vmem:[#allocation17 + $0x970] sm:$0xff] }
 0x3b1   :  { %v1585_v50 = vld [vmem:[#allocation17 + $0x9a0] sm:$0xff] }
 0x3b2   :  { %v3165_v56 = vmax.f32 %v1271_v54, 0.0  ;;  %v3167_v57 = vmax.f32 %v1272_v55, 0.0  ;;  %v1202_v58 = vpop.f32.mrf.mxu2  ;;  %v1222_v60 = vpop.f32.mrf.mxu3  ;;  %v1309_v51 = vld [vmem:[#allocation17 + $0x100] sm:$0xff]  ;;  %v1303_v54 = vld [vmem:[#allocation17 + $0xd0] sm:$0xff] }
 0x3b3   :  { %v1265_v0 = vperm.slane %v1202_v58, 0  ;;  %v1266_v3 = vperm.slane %v1222_v60, 0  ;;  %v1405_v36 = vld [vmem:[#allocation17 + $0x400] sm:$0xff]  ;;  %v1399_v55 = vld [vmem:[#allocation17 + $0x3d0] sm:$0xff] }
 0x3b4   :  { %1717 = vmatmul.f32.vlgmr.msrb.gmra.mxu0 %v3165_v56  ;;  %1737 = vmatmul.f32.vlgmr.msrb.gmra.mxu1 %v3167_v57  ;;  %v1477_v58 = vld [vmem:[#allocation17 + $0x640] sm:$0xff] }
 0x3b5   :  { %v1269_v4 = vadd.f32 %v1265_v0, %v1178_v63  ;;  %v1270_v5 = vadd.f32 %v1266_v3, %v1179_v22  ;;  %1861 = vmatpush.msrb.mxu0 %v1561_v61  ;;  %1881 = vmatpush.msrb.mxu1 %v1657_v62  ;;  %v1573_v60 = vld [vmem:[#allocation17 + $0x940] sm:$0xff]  ;;  %v1471_v63 = vld [vmem:[#allocation17 + $0x610] sm:$0xff]  ;;  %v1562_v0 = vld [vmem:[#allocation17 + $0x8e8] sm:$0xff] }
 0x3b6   :  { %v1297_v61 = vld [vmem:[#allocation17 + $0xa0] sm:$0xff]  ;;  %v1567_v22 = vld [vmem:[#allocation17 + $0x910] sm:$0xff]  ;;  %v1658_v3 = vld [vmem:[#allocation17 + $0xbe8] sm:$0xff] }
 0x3b7   :  { %v3173_v8 = vmax.f32 %v1269_v4, 0.0  ;;  %v3175_v9 = vmax.f32 %v1270_v5, 0.0  ;;  %1862 = vmatpush.msrb.mxu0 %v1555_v1  ;;  %1882 = vmatpush.msrb.mxu1 %v1651_v2  ;;  %v1393_v62 = vld [vmem:[#allocation17 + $0x3a0] sm:$0xff]  ;;  %v1291_v1 = vld [vmem:[#allocation17 + $0x70] sm:$0xff]  ;;  %v1556_v4 = vld [vmem:[#allocation17 + $0x8b8] sm:$0xff] }
 0x3b8   :  { %v1387_v2 = vld [vmem:[#allocation17 + $0x370] sm:$0xff]  ;;  %v1652_v5 = vld [vmem:[#allocation17 + $0xbb8] sm:$0xff] }
 0x3b9   :  { %1863 = vmatpush.msrb.mxu0 %v1549_v6  ;;  %1883 = vmatpush.msrb.mxu1 %v1645_v7  ;;  %v1285_v6 = vld [vmem:[#allocation17 + $0x40] sm:$0xff] }
 0x3ba   :  { %1677 = vmatmul.f32.vlgmr.msra.gmra.mxu2 %v3173_v8  ;;  %1697 = vmatmul.f32.vlgmr.msra.gmra.mxu3 %v3175_v9  ;;  %v1381_v7 = vld [vmem:[#allocation17 + $0x340] sm:$0xff] }
 0x3bb   :  { %1821 = vmatpush.msra.mxu2 %v1369_v35  ;;  %1841 = vmatpush.msra.mxu3 %v1465_v59  ;;  %v1550_v35 = vld [vmem:[#allocation17 + $0x888] sm:$0xff] }
 0x3bc   :  { %1864 = vmatpush.msrb.mxu0 %v1543_v10  ;;  %1884 = vmatpush.msrb.mxu1 %v1639_v11  ;;  %v1646_v59 = vld [vmem:[#allocation17 + $0xb88] sm:$0xff]  ;;  %v1279_v10 = vld [vmem:[#allocation17 + $0x10] sm:$0xff] }
 0x3bd   :  { %1797 = vmatmul.f32.vlgmr.msra.gmra.mxu0 %v3165_v56  ;;  %1817 = vmatmul.f32.vlgmr.msra.gmra.mxu1 %v3167_v57  ;;  %v1375_v11 = vld [vmem:[#allocation17 + $0x310] sm:$0xff] }
 0x3be   :  { %1822 = vmatpush.msra.mxu2 %v1363_v12  ;;  %1842 = vmatpush.msra.mxu3 %v1459_v14  ;;  %v1370_v12 = vld [vmem:[#allocation17 + $0x2e8] sm:$0xff] }
 0x3bf   :  { %1865 = vmatpush.msrb.mxu0 %v1537_v15  ;;  %1885 = vmatpush.msrb.mxu1 %v1633_v16  ;;  %v1466_v14 = vld [vmem:[#allocation17 + $0x5e8] sm:$0xff]  ;;  %v1544_v15 = vld [vmem:[#allocation17 + $0x858] sm:$0xff] }
 0x3c0   :  { %1823 = vmatpush.msra.mxu2 %v1357_v17  ;;  %1843 = vmatpush.msra.mxu3 %v1453_v18  ;;  %v1640_v16 = vld [vmem:[#allocation17 + $0xb58] sm:$0xff] }
 0x3c1   :  { %1866 = vmatpush.msrb.mxu0 %v1531_v19  ;;  %1886 = vmatpush.msrb.mxu1 %v1627_v20  ;;  %v1364_v17 = vld [vmem:[#allocation17 + $0x2b8] sm:$0xff]  ;;  %v1538_v19 = vld [vmem:[#allocation17 + $0x828] sm:$0xff] }
 0x3c2   :  { %1824 = vmatpush.msra.mxu2 %v1351_v21  ;;  %1844 = vmatpush.msra.mxu3 %v1447_v23  ;;  %v1460_v18 = vld [vmem:[#allocation17 + $0x5b8] sm:$0xff]  ;;  %v1634_v20 = vld [vmem:[#allocation17 + $0xb28] sm:$0xff] }
 0x3c3   :  { %1867 = vmatpush.msrb.mxu0 %v1525_v24  ;;  %1887 = vmatpush.msrb.mxu1 %v1621_v25  ;;  %v1358_v21 = vld [vmem:[#allocation17 + $0x288] sm:$0xff]  ;;  %v1532_v24 = vld [vmem:[#allocation17 + $0x7f8] sm:$0xff] }
 0x3c4   :  { %1757 = vmatmul.f32.vlgmr.msrb.gmra.mxu2 %v3173_v8  ;;  %1777 = vmatmul.f32.vlgmr.msrb.gmra.mxu3 %v3175_v9  ;;  %v1454_v23 = vld [vmem:[#allocation17 + $0x588] sm:$0xff]  ;;  %v1628_v25 = vld [vmem:[#allocation17 + $0xaf8] sm:$0xff] }
 0x3c5   :  { %1825 = vmatpush.msra.mxu2 %v1345_v26  ;;  %1845 = vmatpush.msra.mxu3 %v1441_v27  ;;  %v1352_v26 = vld [vmem:[#allocation17 + $0x258] sm:$0xff] }
 0x3c6   :  { %1868 = vmatpush.msrb.mxu0 %v1519_v28  ;;  %1888 = vmatpush.msrb.mxu1 %v1615_v29  ;;  %v1448_v27 = vld [vmem:[#allocation17 + $0x558] sm:$0xff]  ;;  %v1526_v28 = vld [vmem:[#allocation17 + $0x7c8] sm:$0xff] }
 0x3c7   :  { %1826 = vmatpush.msra.mxu2 %v1339_v30  ;;  %1846 = vmatpush.msra.mxu3 %v1435_v31  ;;  %v1622_v29 = vld [vmem:[#allocation17 + $0xac8] sm:$0xff] }
 0x3c8   :  { %1869 = vmatpush.msrb.mxu0 %v1513_v32  ;;  %1889 = vmatpush.msrb.mxu1 %v1609_v13  ;;  %v1346_v30 = vld [vmem:[#allocation17 + $0x228] sm:$0xff]  ;;  %v1520_v32 = vld [vmem:[#allocation17 + $0x798] sm:$0xff] }
 0x3c9   :  { %1827 = vmatpush.msra.mxu2 %v1333_v33  ;;  %1847 = vmatpush.msra.mxu3 %v1429_v34  ;;  %v1442_v31 = vld [vmem:[#allocation17 + $0x528] sm:$0xff]  ;;  %v1616_v13 = vld [vmem:[#allocation17 + $0xa98] sm:$0xff] }
 0x3ca   :  { %1870 = vmatpush.msrb.mxu0 %v1507_v37  ;;  %1890 = vmatpush.msrb.mxu1 %v1603_v38  ;;  %v1340_v33 = vld [vmem:[#allocation17 + $0x1f8] sm:$0xff]  ;;  %v1514_v37 = vld [vmem:[#allocation17 + $0x768] sm:$0xff] }
 0x3cb   :  { %1828 = vmatpush.msra.mxu2 %v1327_v39  ;;  %1848 = vmatpush.msra.mxu3 %v1423_v40  ;;  %v1436_v34 = vld [vmem:[#allocation17 + $0x4f8] sm:$0xff]  ;;  %v1610_v38 = vld [vmem:[#allocation17 + $0xa68] sm:$0xff] }
 0x3cc   :  { %1871 = vmatpush.msrb.mxu0 %v1501_v41  ;;  %1891 = vmatpush.msrb.mxu1 %v1597_v42  ;;  %v1334_v39 = vld [vmem:[#allocation17 + $0x1c8] sm:$0xff]  ;;  %v1508_v41 = vld [vmem:[#allocation17 + $0x738] sm:$0xff] }
 0x3cd   :  { %1829 = vmatpush.msra.mxu2 %v1321_v43  ;;  %1849 = vmatpush.msra.mxu3 %v1417_v44  ;;  %v1430_v40 = vld [vmem:[#allocation17 + $0x4c8] sm:$0xff]  ;;  %v1604_v42 = vld [vmem:[#allocation17 + $0xa38] sm:$0xff] }
 0x3ce   :  { %1872 = vmatpush.msrb.mxu0 %v1495_v45  ;;  %1892 = vmatpush.msrb.mxu1 %v1591_v46  ;;  %v1328_v43 = vld [vmem:[#allocation17 + $0x198] sm:$0xff]  ;;  %v1502_v45 = vld [vmem:[#allocation17 + $0x708] sm:$0xff] }
 0x3cf   :  { %1830 = vmatpush.msra.mxu2 %v1315_v47  ;;  %1850 = vmatpush.msra.mxu3 %v1411_v48  ;;  %v1424_v44 = vld [vmem:[#allocation17 + $0x498] sm:$0xff]  ;;  %v1598_v46 = vld [vmem:[#allocation17 + $0xa08] sm:$0xff] }
 0x3d0   :  { %1873 = vmatpush.msrb.mxu0 %v1489_v49  ;;  %1893 = vmatpush.msrb.mxu1 %v1585_v50  ;;  %v1322_v47 = vld [vmem:[#allocation17 + $0x168] sm:$0xff]  ;;  %v1496_v49 = vld [vmem:[#allocation17 + $0x6d8] sm:$0xff] }
 0x3d1   :  { %1831 = vmatpush.msra.mxu2 %v1309_v51  ;;  %1851 = vmatpush.msra.mxu3 %v1405_v36  ;;  %v1418_v48 = vld [vmem:[#allocation17 + $0x468] sm:$0xff]  ;;  %v1592_v50 = vld [vmem:[#allocation17 + $0x9d8] sm:$0xff] }
 0x3d2   :  { %1874 = vmatpush.msrb.mxu0 %v1483_v52  ;;  %1894 = vmatpush.msrb.mxu1 %v1579_v53  ;;  %v1316_v51 = vld [vmem:[#allocation17 + $0x138] sm:$0xff]  ;;  %v1490_v52 = vld [vmem:[#allocation17 + $0x6a8] sm:$0xff] }
 0x3d3   :  { %1832 = vmatpush.msra.mxu2 %v1303_v54  ;;  %1852 = vmatpush.msra.mxu3 %v1399_v55  ;;  %v1412_v36 = vld [vmem:[#allocation17 + $0x438] sm:$0xff]  ;;  %v1586_v53 = vld [vmem:[#allocation17 + $0x9a8] sm:$0xff] }
 0x3d4   :  { %1875 = vmatpush.msrb.mxu0 %v1477_v58  ;;  %1895 = vmatpush.msrb.mxu1 %v1573_v60  ;;  %v1310_v54 = vld [vmem:[#allocation17 + $0x108] sm:$0xff]  ;;  %v1484_v58 = vld [vmem:[#allocation17 + $0x678] sm:$0xff] }
 0x3d5   :  { %1833 = vmatpush.msra.mxu2 %v1297_v61  ;;  %1853 = vmatpush.msra.mxu3 %v1393_v62  ;;  %v1406_v55 = vld [vmem:[#allocation17 + $0x408] sm:$0xff]  ;;  %v1580_v60 = vld [vmem:[#allocation17 + $0x978] sm:$0xff] }
 0x3d6   :  { %1876 = vmatpush.msrb.mxu0 %v1471_v63  ;;  %1896 = vmatpush.msrb.mxu1 %v1567_v22  ;;  %v1304_v61 = vld [vmem:[#allocation17 + $0xd8] sm:$0xff]  ;;  %v1478_v63 = vld [vmem:[#allocation17 + $0x648] sm:$0xff] }
 0x3d7   :  { %1877 = vmatmul.f32.vlgmr.msrb.gmra.mxu0 %v3165_v56  ;;  %1897 = vmatmul.f32.vlgmr.msrb.gmra.mxu1 %v3167_v57  ;;  %v1400_v62 = vld [vmem:[#allocation17 + $0x3d8] sm:$0xff]  ;;  %v1574_v22 = vld [vmem:[#allocation17 + $0x948] sm:$0xff] }
 0x3d8   :  { %1941 = vmatpush.msra.mxu0 %v1562_v0  ;;  %1961 = vmatpush.msra.mxu1 %v1658_v3  ;;  %v1298_v0 = vld [vmem:[#allocation17 + $0xa8] sm:$0xff] }
 0x3d9   :  { %1834 = vmatpush.msra.mxu2 %v1291_v1  ;;  %1854 = vmatpush.msra.mxu3 %v1387_v2  ;;  %v1394_v3 = vld [vmem:[#allocation17 + $0x3a8] sm:$0xff]  ;;  %v1472_v1 = vld [vmem:[#allocation17 + $0x618] sm:$0xff] }
 0x3da   :  { %1942 = vmatpush.msra.mxu0 %v1556_v4  ;;  %1962 = vmatpush.msra.mxu1 %v1652_v5  ;;  %v1568_v2 = vld [vmem:[#allocation17 + $0x918] sm:$0xff]  ;;  %v1563_v4 = vld [vmem:[#allocation17 + $0x8f0] sm:$0xff] }
 0x3db   :  { %1835 = vmatpush.msra.mxu2 %v1285_v6  ;;  %1855 = vmatpush.msra.mxu3 %v1381_v7  ;;  %v1659_v5 = vld [vmem:[#allocation17 + $0xbf0] sm:$0xff]  ;;  %v1292_v6 = vld [vmem:[#allocation17 + $0x78] sm:$0xff] }
 0x3dc   :  { %1943 = vmatpush.msra.mxu0 %v1550_v35  ;;  %1963 = vmatpush.msra.mxu1 %v1646_v59  ;;  %v1388_v7 = vld [vmem:[#allocation17 + $0x378] sm:$0xff]  ;;  %v1557_v35 = vld [vmem:[#allocation17 + $0x8c0] sm:$0xff] }
 0x3dd   :  { %1836 = vmatpush.msra.mxu2 %v1279_v10  ;;  %1856 = vmatpush.msra.mxu3 %v1375_v11  ;;  %v1653_v59 = vld [vmem:[#allocation17 + $0xbc0] sm:$0xff]  ;;  %v1286_v10 = vld [vmem:[#allocation17 + $0x48] sm:$0xff] }
 0x3de   :  { %1837 = vmatmul.f32.vlgmr.msra.gmra.mxu2 %v3173_v8  ;;  %1857 = vmatmul.f32.vlgmr.msra.gmra.mxu3 %v3175_v9  ;;  %v1382_v11 = vld [vmem:[#allocation17 + $0x348] sm:$0xff] }
 0x3df   :  { %1901 = vmatpush.msrb.mxu2 %v1370_v12  ;;  %1921 = vmatpush.msrb.mxu3 %v1466_v14  ;;  %v1551_v12 = vld [vmem:[#allocation17 + $0x890] sm:$0xff] }
 0x3e0   :  { %1944 = vmatpush.msra.mxu0 %v1544_v15  ;;  %1964 = vmatpush.msra.mxu1 %v1640_v16  ;;  %v1647_v14 = vld [vmem:[#allocation17 + $0xb90] sm:$0xff]  ;;  %v1280_v15 = vld [vmem:[#allocation17 + $0x18] sm:$0xff] }
 0x3e1   :  { %1902 = vmatpush.msrb.mxu2 %v1364_v17  ;;  %1922 = vmatpush.msrb.mxu3 %v1460_v18  ;;  %v1376_v16 = vld [vmem:[#allocation17 + $0x318] sm:$0xff]  ;;  %v1371_v17 = vld [vmem:[#allocation17 + $0x2f0] sm:$0xff] }
 0x3e2   :  { %1945 = vmatpush.msra.mxu0 %v1538_v19  ;;  %1965 = vmatpush.msra.mxu1 %v1634_v20  ;;  %v1467_v18 = vld [vmem:[#allocation17 + $0x5f0] sm:$0xff]  ;;  %v1545_v19 = vld [vmem:[#allocation17 + $0x860] sm:$0xff] }
 0x3e3   :  { %1903 = vmatpush.msrb.mxu2 %v1358_v21  ;;  %1923 = vmatpush.msrb.mxu3 %v1454_v23  ;;  %v1641_v20 = vld [vmem:[#allocation17 + $0xb60] sm:$0xff] }
 0x3e4   :  { %1946 = vmatpush.msra.mxu0 %v1532_v24  ;;  %1966 = vmatpush.msra.mxu1 %v1628_v25  ;;  %v1365_v21 = vld [vmem:[#allocation17 + $0x2c0] sm:$0xff]  ;;  %v1539_v24 = vld [vmem:[#allocation17 + $0x830] sm:$0xff] }
 0x3e5   :  { %1904 = vmatpush.msrb.mxu2 %v1352_v26  ;;  %1924 = vmatpush.msrb.mxu3 %v1448_v27  ;;  %v1461_v23 = vld [vmem:[#allocation17 + $0x5c0] sm:$0xff]  ;;  %v1635_v25 = vld [vmem:[#allocation17 + $0xb30] sm:$0xff] }
 0x3e6   :  { %1947 = vmatpush.msra.mxu0 %v1526_v28  ;;  %1967 = vmatpush.msra.mxu1 %v1622_v29  ;;  %v1359_v26 = vld [vmem:[#allocation17 + $0x290] sm:$0xff]  ;;  %v1533_v28 = vld [vmem:[#allocation17 + $0x800] sm:$0xff] }
 0x3e7   :  { %1905 = vmatpush.msrb.mxu2 %v1346_v30  ;;  %1925 = vmatpush.msrb.mxu3 %v1442_v31  ;;  %v1455_v27 = vld [vmem:[#allocation17 + $0x590] sm:$0xff]  ;;  %v1629_v29 = vld [vmem:[#allocation17 + $0xb00] sm:$0xff] }
 0x3e8   :  { %1948 = vmatpush.msra.mxu0 %v1520_v32  ;;  %1968 = vmatpush.msra.mxu1 %v1616_v13  ;;  %v1353_v30 = vld [vmem:[#allocation17 + $0x260] sm:$0xff]  ;;  %v1527_v32 = vld [vmem:[#allocation17 + $0x7d0] sm:$0xff] }
 0x3e9   :  { %1906 = vmatpush.msrb.mxu2 %v1340_v33  ;;  %1926 = vmatpush.msrb.mxu3 %v1436_v34  ;;  %v1449_v31 = vld [vmem:[#allocation17 + $0x560] sm:$0xff]  ;;  %v1623_v13 = vld [vmem:[#allocation17 + $0xad0] sm:$0xff] }
 0x3ea   :  { %1949 = vmatpush.msra.mxu0 %v1514_v37  ;;  %1969 = vmatpush.msra.mxu1 %v1610_v38  ;;  %v1347_v33 = vld [vmem:[#allocation17 + $0x230] sm:$0xff]  ;;  %v1521_v37 = vld [vmem:[#allocation17 + $0x7a0] sm:$0xff] }
 0x3eb   :  { %1907 = vmatpush.msrb.mxu2 %v1334_v39  ;;  %1927 = vmatpush.msrb.mxu3 %v1430_v40  ;;  %v1443_v34 = vld [vmem:[#allocation17 + $0x530] sm:$0xff]  ;;  %v1617_v38 = vld [vmem:[#allocation17 + $0xaa0] sm:$0xff] }
 0x3ec   :  { %1950 = vmatpush.msra.mxu0 %v1508_v41  ;;  %1970 = vmatpush.msra.mxu1 %v1604_v42  ;;  %v1341_v39 = vld [vmem:[#allocation17 + $0x200] sm:$0xff]  ;;  %v1515_v41 = vld [vmem:[#allocation17 + $0x770] sm:$0xff] }
 0x3ed   :  { %1908 = vmatpush.msrb.mxu2 %v1328_v43  ;;  %1928 = vmatpush.msrb.mxu3 %v1424_v44  ;;  %v1437_v40 = vld [vmem:[#allocation17 + $0x500] sm:$0xff]  ;;  %v1611_v42 = vld [vmem:[#allocation17 + $0xa70] sm:$0xff] }
 0x3ee   :  { %1951 = vmatpush.msra.mxu0 %v1502_v45  ;;  %1971 = vmatpush.msra.mxu1 %v1598_v46  ;;  %v1335_v43 = vld [vmem:[#allocation17 + $0x1d0] sm:$0xff]  ;;  %v1509_v45 = vld [vmem:[#allocation17 + $0x740] sm:$0xff] }
 0x3ef   :  { %1909 = vmatpush.msrb.mxu2 %v1322_v47  ;;  %1929 = vmatpush.msrb.mxu3 %v1418_v48  ;;  %v1431_v44 = vld [vmem:[#allocation17 + $0x4d0] sm:$0xff]  ;;  %v1605_v46 = vld [vmem:[#allocation17 + $0xa40] sm:$0xff] }
 0x3f0   :  { %1952 = vmatpush.msra.mxu0 %v1496_v49  ;;  %1972 = vmatpush.msra.mxu1 %v1592_v50  ;;  %v1329_v47 = vld [vmem:[#allocation17 + $0x1a0] sm:$0xff]  ;;  %v1503_v49 = vld [vmem:[#allocation17 + $0x710] sm:$0xff] }
 0x3f1   :  { %1910 = vmatpush.msrb.mxu2 %v1316_v51  ;;  %1930 = vmatpush.msrb.mxu3 %v1412_v36  ;;  %v1425_v48 = vld [vmem:[#allocation17 + $0x4a0] sm:$0xff]  ;;  %v1599_v50 = vld [vmem:[#allocation17 + $0xa10] sm:$0xff] }
 0x3f2   :  { %1953 = vmatpush.msra.mxu0 %v1490_v52  ;;  %1973 = vmatpush.msra.mxu1 %v1586_v53  ;;  %v1323_v51 = vld [vmem:[#allocation17 + $0x170] sm:$0xff]  ;;  %v1497_v52 = vld [vmem:[#allocation17 + $0x6e0] sm:$0xff] }
 0x3f3   :  { %1911 = vmatpush.msrb.mxu2 %v1310_v54  ;;  %1931 = vmatpush.msrb.mxu3 %v1406_v55  ;;  %v1419_v36 = vld [vmem:[#allocation17 + $0x470] sm:$0xff]  ;;  %v1593_v53 = vld [vmem:[#allocation17 + $0x9e0] sm:$0xff] }
 0x3f4   :  { %1954 = vmatpush.msra.mxu0 %v1484_v58  ;;  %1974 = vmatpush.msra.mxu1 %v1580_v60  ;;  %v1317_v54 = vld [vmem:[#allocation17 + $0x140] sm:$0xff]  ;;  %v1491_v58 = vld [vmem:[#allocation17 + $0x6b0] sm:$0xff] }
 0x3f5   :  { %1912 = vmatpush.msrb.mxu2 %v1304_v61  ;;  %1932 = vmatpush.msrb.mxu3 %v1400_v62  ;;  %v1413_v55 = vld [vmem:[#allocation17 + $0x440] sm:$0xff]  ;;  %v1587_v60 = vld [vmem:[#allocation17 + $0x9b0] sm:$0xff] }
 0x3f6   :  { %1955 = vmatpush.msra.mxu0 %v1478_v63  ;;  %1975 = vmatpush.msra.mxu1 %v1574_v22  ;;  %v1311_v61 = vld [vmem:[#allocation17 + $0x110] sm:$0xff]  ;;  %v1485_v63 = vld [vmem:[#allocation17 + $0x680] sm:$0xff] }
 0x3f7   :  { %1913 = vmatpush.msrb.mxu2 %v1298_v0  ;;  %1933 = vmatpush.msrb.mxu3 %v1394_v3  ;;  %v1407_v62 = vld [vmem:[#allocation17 + $0x410] sm:$0xff]  ;;  %v1581_v22 = vld [vmem:[#allocation17 + $0x980] sm:$0xff] }
 0x3f8   :  { %1956 = vmatpush.msra.mxu0 %v1472_v1  ;;  %1976 = vmatpush.msra.mxu1 %v1568_v2  ;;  %v1305_v0 = vld [vmem:[#allocation17 + $0xe0] sm:$0xff]  ;;  %v1479_v1 = vld [vmem:[#allocation17 + $0x650] sm:$0xff] }
 0x3f9   :  { %1957 = vmatmul.f32.vlgmr.msra.gmra.mxu0 %v3165_v56  ;;  %1977 = vmatmul.f32.vlgmr.msra.gmra.mxu1 %v3167_v57  ;;  %v1401_v3 = vld [vmem:[#allocation17 + $0x3e0] sm:$0xff]  ;;  %v1575_v2 = vld [vmem:[#allocation17 + $0x950] sm:$0xff] }
 0x3fa   :  { %2021 = vmatpush.msrb.mxu0 %v1563_v4  ;;  %2041 = vmatpush.msrb.mxu1 %v1659_v5  ;;  %v1299_v4 = vld [vmem:[#allocation17 + $0xb0] sm:$0xff] }
 0x3fb   :  { %1914 = vmatpush.msrb.mxu2 %v1292_v6  ;;  %1934 = vmatpush.msrb.mxu3 %v1388_v7  ;;  %v1395_v5 = vld [vmem:[#allocation17 + $0x3b0] sm:$0xff]  ;;  %v1473_v6 = vld [vmem:[#allocation17 + $0x620] sm:$0xff] }
 0x3fc   :  { %2022 = vmatpush.msrb.mxu0 %v1557_v35  ;;  %2042 = vmatpush.msrb.mxu1 %v1653_v59  ;;  %v1569_v7 = vld [vmem:[#allocation17 + $0x920] sm:$0xff]  ;;  %v1564_v35 = vld [vmem:[#allocation17 + $0x8f8] sm:$0xff] }
 0x3fd   :  { %1915 = vmatpush.msrb.mxu2 %v1286_v10  ;;  %1935 = vmatpush.msrb.mxu3 %v1382_v11  ;;  %v1660_v59 = vld [vmem:[#allocation17 + $0xbf8] sm:$0xff]  ;;  %v1293_v10 = vld [vmem:[#allocation17 + $0x80] sm:$0xff] }
 0x3fe   :  { %2023 = vmatpush.msrb.mxu0 %v1551_v12  ;;  %2043 = vmatpush.msrb.mxu1 %v1647_v14  ;;  %v1389_v11 = vld [vmem:[#allocation17 + $0x380] sm:$0xff]  ;;  %v1558_v12 = vld [vmem:[#allocation17 + $0x8c8] sm:$0xff] }
 0x3ff   :  { %1916 = vmatpush.msrb.mxu2 %v1280_v15  ;;  %1936 = vmatpush.msrb.mxu3 %v1376_v16  ;;  %v1654_v14 = vld [vmem:[#allocation17 + $0xbc8] sm:$0xff]  ;;  %v1287_v15 = vld [vmem:[#allocation17 + $0x50] sm:$0xff] }
 0x400   :  { %1917 = vmatmul.f32.vlgmr.msrb.gmra.mxu2 %v3173_v8  ;;  %1937 = vmatmul.f32.vlgmr.msrb.gmra.mxu3 %v3175_v9  ;;  %v1383_v16 = vld [vmem:[#allocation17 + $0x350] sm:$0xff] }
 0x401   :  { %1981 = vmatpush.msra.mxu2 %v1371_v17  ;;  %2001 = vmatpush.msra.mxu3 %v1467_v18  ;;  %v1552_v17 = vld [vmem:[#allocation17 + $0x898] sm:$0xff] }
 0x402   :  { %2024 = vmatpush.msrb.mxu0 %v1545_v19  ;;  %2044 = vmatpush.msrb.mxu1 %v1641_v20  ;;  %v1648_v18 = vld [vmem:[#allocation17 + $0xb98] sm:$0xff]  ;;  %v1281_v19 = vld [vmem:[#allocation17 + $0x20] sm:$0xff] }
 0x403   :  { %1982 = vmatpush.msra.mxu2 %v1365_v21  ;;  %2002 = vmatpush.msra.mxu3 %v1461_v23  ;;  %v1377_v20 = vld [vmem:[#allocation17 + $0x320] sm:$0xff]  ;;  %v1372_v21 = vld [vmem:[#allocation17 + $0x2f8] sm:$0xff] }
 0x404   :  { %2025 = vmatpush.msrb.mxu0 %v1539_v24  ;;  %2045 = vmatpush.msrb.mxu1 %v1635_v25  ;;  %v1468_v23 = vld [vmem:[#allocation17 + $0x5f8] sm:$0xff]  ;;  %v1546_v24 = vld [vmem:[#allocation17 + $0x868] sm:$0xff] }
 0x405   :  { %1983 = vmatpush.msra.mxu2 %v1359_v26  ;;  %2003 = vmatpush.msra.mxu3 %v1455_v27  ;;  %v1642_v25 = vld [vmem:[#allocation17 + $0xb68] sm:$0xff] }
 0x406   :  { %2026 = vmatpush.msrb.mxu0 %v1533_v28  ;;  %2046 = vmatpush.msrb.mxu1 %v1629_v29  ;;  %v1366_v26 = vld [vmem:[#allocation17 + $0x2c8] sm:$0xff]  ;;  %v1540_v28 = vld [vmem:[#allocation17 + $0x838] sm:$0xff] }
 0x407   :  { %1984 = vmatpush.msra.mxu2 %v1353_v30  ;;  %2004 = vmatpush.msra.mxu3 %v1449_v31  ;;  %v1462_v27 = vld [vmem:[#allocation17 + $0x5c8] sm:$0xff]  ;;  %v1636_v29 = vld [vmem:[#allocation17 + $0xb38] sm:$0xff] }
 0x408   :  { %2027 = vmatpush.msrb.mxu0 %v1527_v32  ;;  %2047 = vmatpush.msrb.mxu1 %v1623_v13  ;;  %v1360_v30 = vld [vmem:[#allocation17 + $0x298] sm:$0xff]  ;;  %v1534_v32 = vld [vmem:[#allocation17 + $0x808] sm:$0xff] }
 0x409   :  { %1985 = vmatpush.msra.mxu2 %v1347_v33  ;;  %2005 = vmatpush.msra.mxu3 %v1443_v34  ;;  %v1456_v31 = vld [vmem:[#allocation17 + $0x598] sm:$0xff]  ;;  %v1630_v13 = vld [vmem:[#allocation17 + $0xb08] sm:$0xff] }
 0x40a   :  { %2028 = vmatpush.msrb.mxu0 %v1521_v37  ;;  %2048 = vmatpush.msrb.mxu1 %v1617_v38  ;;  %v1354_v33 = vld [vmem:[#allocation17 + $0x268] sm:$0xff]  ;;  %v1528_v37 = vld [vmem:[#allocation17 + $0x7d8] sm:$0xff] }
 0x40b   :  { %1986 = vmatpush.msra.mxu2 %v1341_v39  ;;  %2006 = vmatpush.msra.mxu3 %v1437_v40  ;;  %v1450_v34 = vld [vmem:[#allocation17 + $0x568] sm:$0xff]  ;;  %v1624_v38 = vld [vmem:[#allocation17 + $0xad8] sm:$0xff] }
 0x40c   :  { %2029 = vmatpush.msrb.mxu0 %v1515_v41  ;;  %2049 = vmatpush.msrb.mxu1 %v1611_v42  ;;  %v1348_v39 = vld [vmem:[#allocation17 + $0x238] sm:$0xff]  ;;  %v1522_v41 = vld [vmem:[#allocation17 + $0x7a8] sm:$0xff] }
 0x40d   :  { %1987 = vmatpush.msra.mxu2 %v1335_v43  ;;  %2007 = vmatpush.msra.mxu3 %v1431_v44  ;;  %v1444_v40 = vld [vmem:[#allocation17 + $0x538] sm:$0xff]  ;;  %v1618_v42 = vld [vmem:[#allocation17 + $0xaa8] sm:$0xff] }
 0x40e   :  { %2030 = vmatpush.msrb.mxu0 %v1509_v45  ;;  %2050 = vmatpush.msrb.mxu1 %v1605_v46  ;;  %v1342_v43 = vld [vmem:[#allocation17 + $0x208] sm:$0xff]  ;;  %v1516_v45 = vld [vmem:[#allocation17 + $0x778] sm:$0xff] }
 0x40f   :  { %1988 = vmatpush.msra.mxu2 %v1329_v47  ;;  %2008 = vmatpush.msra.mxu3 %v1425_v48  ;;  %v1438_v44 = vld [vmem:[#allocation17 + $0x508] sm:$0xff]  ;;  %v1612_v46 = vld [vmem:[#allocation17 + $0xa78] sm:$0xff] }
 0x410   :  { %2031 = vmatpush.msrb.mxu0 %v1503_v49  ;;  %2051 = vmatpush.msrb.mxu1 %v1599_v50  ;;  %v1336_v47 = vld [vmem:[#allocation17 + $0x1d8] sm:$0xff]  ;;  %v1510_v49 = vld [vmem:[#allocation17 + $0x748] sm:$0xff] }
 0x411   :  { %1989 = vmatpush.msra.mxu2 %v1323_v51  ;;  %2009 = vmatpush.msra.mxu3 %v1419_v36  ;;  %v1432_v48 = vld [vmem:[#allocation17 + $0x4d8] sm:$0xff]  ;;  %v1606_v50 = vld [vmem:[#allocation17 + $0xa48] sm:$0xff] }
 0x412   :  { %2032 = vmatpush.msrb.mxu0 %v1497_v52  ;;  %2052 = vmatpush.msrb.mxu1 %v1593_v53  ;;  %v1330_v51 = vld [vmem:[#allocation17 + $0x1a8] sm:$0xff]  ;;  %v1504_v52 = vld [vmem:[#allocation17 + $0x718] sm:$0xff] }
 0x413   :  { %1990 = vmatpush.msra.mxu2 %v1317_v54  ;;  %2010 = vmatpush.msra.mxu3 %v1413_v55  ;;  %v1426_v36 = vld [vmem:[#allocation17 + $0x4a8] sm:$0xff]  ;;  %v1600_v53 = vld [vmem:[#allocation17 + $0xa18] sm:$0xff] }
 0x414   :  { %2033 = vmatpush.msrb.mxu0 %v1491_v58  ;;  %2053 = vmatpush.msrb.mxu1 %v1587_v60  ;;  %v1324_v54 = vld [vmem:[#allocation17 + $0x178] sm:$0xff]  ;;  %v1498_v58 = vld [vmem:[#allocation17 + $0x6e8] sm:$0xff] }
 0x415   :  { %1991 = vmatpush.msra.mxu2 %v1311_v61  ;;  %2011 = vmatpush.msra.mxu3 %v1407_v62  ;;  %v1420_v55 = vld [vmem:[#allocation17 + $0x478] sm:$0xff]  ;;  %v1594_v60 = vld [vmem:[#allocation17 + $0x9e8] sm:$0xff] }
 0x416   :  { %2034 = vmatpush.msrb.mxu0 %v1485_v63  ;;  %2054 = vmatpush.msrb.mxu1 %v1581_v22  ;;  %v1318_v61 = vld [vmem:[#allocation17 + $0x148] sm:$0xff]  ;;  %v1492_v63 = vld [vmem:[#allocation17 + $0x6b8] sm:$0xff] }
 0x417   :  { %1992 = vmatpush.msra.mxu2 %v1305_v0  ;;  %2012 = vmatpush.msra.mxu3 %v1401_v3  ;;  %v1414_v62 = vld [vmem:[#allocation17 + $0x448] sm:$0xff]  ;;  %v1588_v22 = vld [vmem:[#allocation17 + $0x9b8] sm:$0xff] }
 0x418   :  { %2035 = vmatpush.msrb.mxu0 %v1479_v1  ;;  %2055 = vmatpush.msrb.mxu1 %v1575_v2  ;;  %v1312_v0 = vld [vmem:[#allocation17 + $0x118] sm:$0xff]  ;;  %v1486_v1 = vld [vmem:[#allocation17 + $0x688] sm:$0xff] }
 0x419   :  { %1993 = vmatpush.msra.mxu2 %v1299_v4  ;;  %2013 = vmatpush.msra.mxu3 %v1395_v5  ;;  %v1408_v3 = vld [vmem:[#allocation17 + $0x418] sm:$0xff]  ;;  %v1582_v2 = vld [vmem:[#allocation17 + $0x988] sm:$0xff] }
 0x41a   :  { %2036 = vmatpush.msrb.mxu0 %v1473_v6  ;;  %2056 = vmatpush.msrb.mxu1 %v1569_v7  ;;  %v1306_v4 = vld [vmem:[#allocation17 + $0xe8] sm:$0xff]  ;;  %v1480_v6 = vld [vmem:[#allocation17 + $0x658] sm:$0xff] }
 0x41b   :  { %2037 = vmatmul.f32.vlgmr.msrb.gmra.mxu0 %v3165_v56  ;;  %2057 = vmatmul.f32.vlgmr.msrb.gmra.mxu1 %v3167_v57  ;;  %v1402_v5 = vld [vmem:[#allocation17 + $0x3e8] sm:$0xff]  ;;  %v1576_v7 = vld [vmem:[#allocation17 + $0x958] sm:$0xff] }
 0x41c   :  { %2101 = vmatpush.msra.mxu0 %v1564_v35  ;;  %2121 = vmatpush.msra.mxu1 %v1660_v59  ;;  %v1300_v35 = vld [vmem:[#allocation17 + $0xb8] sm:$0xff] }
 0x41d   :  { %1994 = vmatpush.msra.mxu2 %v1293_v10  ;;  %2014 = vmatpush.msra.mxu3 %v1389_v11  ;;  %v1396_v59 = vld [vmem:[#allocation17 + $0x3b8] sm:$0xff]  ;;  %v1474_v10 = vld [vmem:[#allocation17 + $0x628] sm:$0xff] }
 0x41e   :  { %2102 = vmatpush.msra.mxu0 %v1558_v12  ;;  %2122 = vmatpush.msra.mxu1 %v1654_v14  ;;  %v1570_v11 = vld [vmem:[#allocation17 + $0x928] sm:$0xff] }
 0x41f   :  { %1995 = vmatpush.msra.mxu2 %v1287_v15  ;;  %2015 = vmatpush.msra.mxu3 %v1383_v16  ;;  %v1294_v12 = vld [vmem:[#allocation17 + $0x88] sm:$0xff]  ;;  %v1288_v15 = vld [vmem:[#allocation17 + $0x58] sm:$0xff] }
 0x420   :  { %2103 = vmatpush.msra.mxu0 %v1552_v17  ;;  %2123 = vmatpush.msra.mxu1 %v1648_v18  ;;  %v1390_v14 = vld [vmem:[#allocation17 + $0x388] sm:$0xff]  ;;  %v1384_v16 = vld [vmem:[#allocation17 + $0x358] sm:$0xff] }
 0x421   :  { %1996 = vmatpush.msra.mxu2 %v1281_v19  ;;  %2016 = vmatpush.msra.mxu3 %v1377_v20  ;;  %v1282_v17 = vld [vmem:[#allocation17 + $0x28] sm:$0xff] }
 0x422   :  { %1997 = vmatmul.f32.vlgmr.msra.gmra.mxu2 %v3173_v8  ;;  %2017 = vmatmul.f32.vlgmr.msra.gmra.mxu3 %v3175_v9  ;;  %v1378_v18 = vld [vmem:[#allocation17 + $0x328] sm:$0xff] }
 0x423   :  { %2061 = vmatpush.msrb.mxu2 %v1372_v21  ;;  %2081 = vmatpush.msrb.mxu3 %v1468_v23 }
 0x424   :  { %2104 = vmatpush.msra.mxu0 %v1546_v24  ;;  %2124 = vmatpush.msra.mxu1 %v1642_v25 }
 0x425   :  { %2062 = vmatpush.msrb.mxu2 %v1366_v26  ;;  %2082 = vmatpush.msrb.mxu3 %v1462_v27 }
 0x426   :  { %2105 = vmatpush.msra.mxu0 %v1540_v28  ;;  %2125 = vmatpush.msra.mxu1 %v1636_v29 }
 0x427   :  { %2063 = vmatpush.msrb.mxu2 %v1360_v30  ;;  %2083 = vmatpush.msrb.mxu3 %v1456_v31 }
 0x428   :  { %2106 = vmatpush.msra.mxu0 %v1534_v32  ;;  %2126 = vmatpush.msra.mxu1 %v1630_v13 }
 0x429   :  { %2064 = vmatpush.msrb.mxu2 %v1354_v33  ;;  %2084 = vmatpush.msrb.mxu3 %v1450_v34 }
 0x42a   :  { %2107 = vmatpush.msra.mxu0 %v1528_v37  ;;  %2127 = vmatpush.msra.mxu1 %v1624_v38 }
 0x42b   :  { %2065 = vmatpush.msrb.mxu2 %v1348_v39  ;;  %2085 = vmatpush.msrb.mxu3 %v1444_v40 }
 0x42c   :  { %2108 = vmatpush.msra.mxu0 %v1522_v41  ;;  %2128 = vmatpush.msra.mxu1 %v1618_v42 }
 0x42d   :  { %2066 = vmatpush.msrb.mxu2 %v1342_v43  ;;  %2086 = vmatpush.msrb.mxu3 %v1438_v44 }
 0x42e   :  { %2109 = vmatpush.msra.mxu0 %v1516_v45  ;;  %2129 = vmatpush.msra.mxu1 %v1612_v46 }
 0x42f   :  { %2067 = vmatpush.msrb.mxu2 %v1336_v47  ;;  %2087 = vmatpush.msrb.mxu3 %v1432_v48 }
 0x430   :  { %2110 = vmatpush.msra.mxu0 %v1510_v49  ;;  %2130 = vmatpush.msra.mxu1 %v1606_v50 }
 0x431   :  { %2068 = vmatpush.msrb.mxu2 %v1330_v51  ;;  %2088 = vmatpush.msrb.mxu3 %v1426_v36  ;;  %v1718_v21 = vpop.f32.mrf.mxu0 }
 0x432   :  { %2111 = vmatpush.msra.mxu0 %v1504_v52  ;;  %2131 = vmatpush.msra.mxu1 %v1600_v53 }
 0x433   :  { %2069 = vmatpush.msrb.mxu2 %v1324_v54  ;;  %2089 = vmatpush.msrb.mxu3 %v1420_v55 }
 0x434   :  { %2112 = vmatpush.msra.mxu0 %v1498_v58  ;;  %2132 = vmatpush.msra.mxu1 %v1594_v60 }
 0x435   :  { %2070 = vmatpush.msrb.mxu2 %v1318_v61  ;;  %2090 = vmatpush.msrb.mxu3 %v1414_v62 }
 0x436   :  { %2113 = vmatpush.msra.mxu0 %v1492_v63  ;;  %2133 = vmatpush.msra.mxu1 %v1588_v22 }
 0x437   :  { %2071 = vmatpush.msrb.mxu2 %v1312_v0  ;;  %2091 = vmatpush.msrb.mxu3 %v1408_v3 }
 0x438   :  { %2114 = vmatpush.msra.mxu0 %v1486_v1  ;;  %2134 = vmatpush.msra.mxu1 %v1582_v2 }
 0x439   :  { %2072 = vmatpush.msrb.mxu2 %v1306_v4  ;;  %2092 = vmatpush.msrb.mxu3 %v1402_v5 }
 0x43a   :  { %2115 = vmatpush.msra.mxu0 %v1480_v6  ;;  %2135 = vmatpush.msra.mxu1 %v1576_v7  ;;  %v1798_v24 = vpop.f32.mrf.mxu0 }
 0x43b   :  { %2073 = vmatpush.msrb.mxu2 %v1300_v35  ;;  %2093 = vmatpush.msrb.mxu3 %v1396_v59 }
 0x43c   :  { %2116 = vmatpush.msra.mxu0 %v1474_v10  ;;  %2136 = vmatpush.msra.mxu1 %v1570_v11 }
 0x43d   :  { %2117 = vmatmul.f32.vlgmr.msra.gmra.mxu0 %v3165_v56  ;;  %2137 = vmatmul.f32.vlgmr.msra.gmra.mxu1 %v3167_v57  ;;  %v1678_v19 = vpop.f32.mrf.mxu2  ;;  %v1698_v20 = vpop.f32.mrf.mxu3 }
 0x43e   :  { %2074 = vmatpush.msrb.mxu2 %v1294_v12  ;;  %2094 = vmatpush.msrb.mxu3 %v1390_v14  ;;  %v1738_v56 = vpop.f32.mrf.mxu1  ;;  %v1699_v13 = vadd.f32 %v1698_v20, %v1678_v19 }
 0x440   :  { %2075 = vmatpush.msrb.mxu2 %v1288_v15  ;;  %2095 = vmatpush.msrb.mxu3 %v1384_v16  ;;  %v1719_v37 = vadd.f32 %v1718_v21, %v1699_v13 }
 0x442   :  { %2076 = vmatpush.msrb.mxu2 %v1282_v17  ;;  %2096 = vmatpush.msrb.mxu3 %v1378_v18  ;;  %v1739_v44 = vadd.f32 %v1738_v56, %v1719_v37 }
 0x443   :  { %2077 = vmatmul.f32.vlgmr.msrb.gmra.mxu2 %v3173_v8  ;;  %2097 = vmatmul.f32.vlgmr.msrb.gmra.mxu3 %v3175_v9 }
 0x444   :  { %v2141_v49 = vmax.f32 %v1739_v44, 0.0 }
 0x446   :  { %v1818_v25 = vpop.f32.mrf.mxu1 }
 0x447   :  { %v1758_v23 = vpop.f32.mrf.mxu2  ;;  %v1778_v57 = vpop.f32.mrf.mxu3 }
 0x448   :  { %v1779_v28 = vadd.f32 %v1778_v57, %v1758_v23 }
 0x44a   :  { %v1799_v31 = vadd.f32 %v1798_v24, %v1779_v28 }
 0x44c   :  { %v1819_v8 = vadd.f32 %v1818_v25, %v1799_v31 }
 0x44e   :  { %v2142_v41 = vmax.f32 %v1819_v8, 0.0 }
 0x450   :  { %v2153_v47 = vrot.slane %v2142_v41, 6 }
 0x452   :  { %v2157_v36 = vsel %vm263_vm1, %v2141_v49, %v2153_v47 }
 0x454   :  { %v1878_v30 = vpop.f32.mrf.mxu0  ;;  %v1898_v32 = vpop.f32.mrf.mxu1 }
 0x461   :  { %v1838_v26 = vpop.f32.mrf.mxu2  ;;  %v1858_v27 = vpop.f32.mrf.mxu3 }
 0x462   :  { %v1859_v29 = vadd.f32 %v1858_v27, %v1838_v26 }
 0x464   :  { %v1879_v33 = vadd.f32 %v1878_v30, %v1859_v29 }
 0x466   :  { %v1899_v38 = vadd.f32 %v1898_v32, %v1879_v33 }
 0x468   :  { %v2143_v45 = vmax.f32 %v1899_v38, 0.0 }
 0x46a   :  { %v2154_v50 = vrot.slane %v2143_v45, 4 }
 0x476   :  { %v1958_v40 = vpop.f32.mrf.mxu0  ;;  %v1978_v43 = vpop.f32.mrf.mxu1 }
 0x483   :  { %v1918_v34 = vpop.f32.mrf.mxu2  ;;  %v1938_v9 = vpop.f32.mrf.mxu3 }
 0x484   :  { %v1939_v39 = vadd.f32 %v1938_v9, %v1918_v34 }
 0x486   :  { %v1959_v42 = vadd.f32 %v1958_v40, %v1939_v39 }
 0x488   :  { %v1979_v46 = vadd.f32 %v1978_v43, %v1959_v42 }
 0x48a   :  { %v2144_v48 = vmax.f32 %v1979_v46, 0.0 }
 0x48c   :  { %v2155_v51 = vrot.slane %v2144_v48, 2 }
 0x48e   :  { %v2159_v52 = vsel %vm2158_vm9, %v2154_v50, %v2155_v51 }
 0x48f   :  { %v2161_v53 = vsel %vm2160_vm10, %v2157_v36, %v2159_v52 }
 0x490   :  { %2165 = vst [vmem:[#allocation19] sm:$0xff] %v2161_v53 }
 0x498   :  { %v2038_v58 = vpop.f32.mrf.mxu0  ;;  %v2058_v60 = vpop.f32.mrf.mxu1 }
 0x4a5   :  { %v1998_v54 = vpop.f32.mrf.mxu2  ;;  %v2018_v55 = vpop.f32.mrf.mxu3 }
 0x4a6   :  { %v2019_v61 = vadd.f32 %v2018_v55, %v1998_v54 }
 0x4a8   :  { %v2039_v22 = vadd.f32 %v2038_v58, %v2019_v61 }
 0x4aa   :  { %v2059_v4 = vadd.f32 %v2058_v60, %v2039_v22 }
 0x4ac   :  { %v2145_v7 = vmax.f32 %v2059_v4, 0.0 }
 0x4ba   :  { %v2118_v3 = vpop.f32.mrf.mxu0  ;;  %v2138_v2 = vpop.f32.mrf.mxu1 }
 0x4c6   :  { %v2078_v62 = vpop.f32.mrf.mxu2  ;;  %v2098_v63 = vpop.f32.mrf.mxu3 }
 0x4c7   :  { %v2099_v0 = vadd.f32 %v2098_v63, %v2078_v62 }
 0x4c9   :  { %v2119_v1 = vadd.f32 %v2118_v3, %v2099_v0 }
 0x4cb   :  { %v2139_v5 = vadd.f32 %v2138_v2, %v2119_v1 }
 0x4cd   :  { %v2146_v6 = vmax.f32 %v2139_v5, 0.0 }
 0x4cf   :  { %v2156_v35 = vrot.slane %v2146_v6, 6 }
 0x4d1   :  { %v2162_v59 = vsel %vm263_vm1, %v2145_v7, %v2156_v35 }
 0x4d2   :  { %2166 = vst [vmem:[#allocation19 + $0x8] sm:$0xf] %v2162_v59 }
 0x4d3   :  { %2177 = dma.vmem_to_hbm [thread:$0]  %s2173_s23, 192, %s2175_s25, [#allocation4]  }
 0x4d4   :  { %2500 = dma.done.wait [#allocation4], 192  }
 0x4d5   :  { %2501 = vsyncadd [#allocation4], 4294967104 }
 0x4d6   :  { %2182 = vsyncpa [#allocation3], 1 }
 0x4d7   :  { %2183 = vsyncpa [#allocation6], 1 }
 0x4d8   :  { %2184 = vsyncpa [#allocation9], 1 }
 0x4d9   :  { %2185 = vsyncpa [#allocation12], 1 }
 0x4da   :  { %2186 = vsyncpa [#allocation15], 1 }
 0x4db   :  { %2187 = vsyncpa [#allocation18], 1 }
 0x4dc   :  { %2188 = vsyncpa [#allocation4], 1 }

</bundles_post_ra>
